<compile_context>
chip_gen: v7x
topology: tpu7x:2x2x1
jax: 0.10.0
libtpu: 0.0.40
codegen_flags: <defaults>
</compile_context>

<pallas_src>
import functools
import math

import jax
import jax.numpy as jnp
from jax.experimental import pallas as pl
from jax.experimental.pallas import tpu as pltpu


# ----------------------------------------------------------------------------
# Parameter-slab layout, shared by the init-time packer and the kernel.
# ----------------------------------------------------------------------------
def _slab_layout(E):
    H10 = 10 * E
    w_sizes = (("qkv1", 3 * E), ("qkv2", 3 * E), ("o2", E), ("f1", H10), ("f2t", H10))
    p_sizes = (("ln1_w", E), ("ln1_b", E), ("ln2_w", E), ("ln2_b", E),
               ("ln3_w", E), ("ln3_b", E), ("qkv1_b", 3 * E), ("qkv2_b", 3 * E),
               ("o2_b", E), ("f1_b", H10), ("f2_b", E))

    def offsets(sizes):
        out, o = {}, 0
        for name, n in sizes:
            out[name] = (o, o + n)
            o += n
        return out, o

    w_off, w_cols = offsets(w_sizes)
    p_off, p_cols = offsets(p_sizes)
    return w_off, w_cols, p_off, p_cols


# ----------------------------------------------------------------------------
# Pallas kernel: whole (tiny) batch in a single invocation.
#   x_ref: (B*T, E) f32   w_ref: (E, 27E) bf16 weight slab
#   p_ref: (1, 24E) f32 bias/LN slab      out_ref: (B*T, E) f32
# ----------------------------------------------------------------------------
def _block_kernel(x_ref, w_ref, p_ref, out_ref, *,
                  B, T, E, n_heads1, n_heads2, w_off, p_off):
    f32, bf16 = jnp.float32, jnp.bfloat16

    def wcols(name):
        lo, hi = w_off[name]
        return w_ref[:, lo:hi]                       # (E or 10E rows?, n) bf16

    def pcols(name):
        lo, hi = p_off[name]
        return p_ref[:, lo:hi]                       # (1, n) f32

    def layer_norm(h, wname, bname):
        mu = jnp.mean(h, axis=-1, keepdims=True)
        var = jnp.mean(jnp.square(h - mu), axis=-1, keepdims=True)
        hn = (h - mu) * jax.lax.rsqrt(var + 1e-5)
        return hn * pcols(wname) + pcols(bname)

    def linear(h, wname, bname):
        y = jnp.dot(h.astype(bf16), wcols(wname), preferred_element_type=f32)
        return y + pcols(bname)

    def matmul_nt(a, b):
        # (M, K) @ (N, K)^T -> (M, N); bf16 MXU operands, f32 accumulation.
        return jax.lax.dot_general(
            a.astype(bf16), b.astype(bf16),
            dimension_numbers=(((1,), (1,)), ((), ())),
            preferred_element_type=f32)

    def softmax_rows(s):
        m = jnp.max(s, axis=-1, keepdims=True)
        e = jnp.exp(s - m)
        return e * pl.reciprocal(jnp.sum(e, axis=-1, keepdims=True), approx=True)

    def attention(q, k, v, n_heads, causal):
        # q, k, v: (N, E) rows of ONE batch element.  1/sqrt(d) is already
        # folded into the Q projection.  Per-head 2-D matmuls on static lane
        # slices: no reshape / transpose relayouts.  n_heads == 1 degenerates
        # to the plain full-width 2-D path.
        N = q.shape[0]
        d = E // n_heads
        if causal:
            row = jax.lax.broadcasted_iota(jnp.int32, (N, N), 0)
            col = jax.lax.broadcasted_iota(jnp.int32, (N, N), 1)
            keep = col <= row
        outs = []
        for h in range(n_heads):
            cs = slice(h * d, (h + 1) * d)
            s = matmul_nt(q[:, cs], k[:, cs])                     # (N, N)
            if causal:
                s = jnp.where(keep, s, -1e30)                     # ~masked_fill(-inf)
            pr = softmax_rows(s)
            outs.append(jnp.dot(pr.astype(bf16), v[:, cs].astype(bf16),
                                preferred_element_type=f32))      # (N, d)
        return outs[0] if n_heads == 1 else jnp.concatenate(outs, axis=-1)

    def erf(z):
        # Abramowitz & Stegun 7.1.26 (max abs err 1.5e-7): exact-GELU math
        # using only exp / mul / add / where.
        a1, a2, a3, a4, a5 = (0.254829592, -0.284496736, 1.421413741,
                              -1.453152027, 1.061405429)
        pc = 0.3275911
        az = jnp.abs(z)
        t = 1.0 / (1.0 + pc * az)
        poly = ((((a5 * t + a4) * t + a3) * t + a2) * t + a1) * t
        e = 1.0 - poly * jnp.exp(-az * az)
        return jnp.where(z >= 0, e, -e)

    x = x_ref[...]                                                # (B*T, E) f32

    # ---- sub-block 1: LN1 + causal self-attn on batch element 0 only --------
    # (PyTorch quirk: Block adds mha1(...)[0], i.e. batch element 0, which
    #  broadcasts over the batch, so only batch 0's attention is needed.)
    xn0 = layer_norm(x[0:T, :], "ln1_w", "ln1_b")
    qkv1 = linear(xn0, "qkv1", "qkv1_b")                          # (T, 3E) fused
    a1 = attention(qkv1[:, :E], qkv1[:, E:2 * E], qkv1[:, 2 * E:],
                   n_heads1, causal=True)                         # (T, E), no out-proj
    x = x + jnp.concatenate([a1] * B, axis=0)                     # broadcast over batch

    # ---- sub-block 2: LN2 + nn.MultiheadAttention (no mask) + residual ------
    xn = layer_norm(x, "ln2_w", "ln2_b")
    qkv2 = linear(xn, "qkv2", "qkv2_b")                           # (B*T, 3E) fused
    q2, k2, v2 = qkv2[:, :E], qkv2[:, E:2 * E], qkv2[:, 2 * E:]
    a2_rows = [attention(q2[b * T:(b + 1) * T], k2[b * T:(b + 1) * T],
                         v2[b * T:(b + 1) * T], n_heads2, causal=False)
               for b in range(B)]
    a2 = a2_rows[0] if B == 1 else jnp.concatenate(a2_rows, axis=0)
    x = x + linear(a2, "o2", "o2_b")                              # out_proj

    # ---- sub-block 3: LN3 + MLP (Linear -> exact GELU -> Linear) + residual -
    xn = layer_norm(x, "ln3_w", "ln3_b")
    h = linear(xn, "f1", "f1_b")                                  # (B*T, 10E)
    h = 0.5 * h * (1.0 + erf(h * (1.0 / math.sqrt(2.0))))
    ff = matmul_nt(h, wcols("f2t")) + pcols("f2_b")               # f2 stored (E,10E)^T
    x = x + ff

    out_ref[...] = x.astype(out_ref.dtype)


# ----------------------------------------------------------------------------
# Init-time (hoisted) parameter prep: fuse QKV, fold 1/sqrt(d) into Q, cast
# matmul weights to bf16, transpose f2, and pack everything into two slabs.
# ----------------------------------------------------------------------------
def pack_block_params(p, n_heads1, n_heads2):
    E = p["q1_w"].shape[0]
    w_off, w_cols, p_off, p_cols = _slab_layout(E)
    s1 = 1.0 / math.sqrt(E // n_heads1)
    s2 = 1.0 / math.sqrt(E // n_heads2)

    w_parts = {
        "qkv1": jnp.concatenate([p["q1_w"] * s1, p["k1_w"], p["v1_w"]], axis=1),
        "qkv2": jnp.concatenate([p["q2_w"] * s2, p["k2_w"], p["v2_w"]], axis=1),
        "o2": p["o2_w"],
        "f1": p["f1_w"],
        "f2t": p["f2_w"].T,
    }
    p_parts = {
        "ln1_w": p["ln1_w"], "ln1_b": p["ln1_b"],
        "ln2_w": p["ln2_w"], "ln2_b": p["ln2_b"],
        "ln3_w": p["ln3_w"], "ln3_b": p["ln3_b"],
        "qkv1_b": jnp.concatenate([p["q1_b"] * s1, p["k1_b"], p["v1_b"]], axis=1),
        "qkv2_b": jnp.concatenate([p["q2_b"] * s2, p["k2_b"], p["v2_b"]], axis=1),
        "o2_b": p["o2_b"], "f1_b": p["f1_b"], "f2_b": p["f2_b"],
    }
    w_slab = jnp.concatenate([w_parts[k] for k in w_off], axis=1).astype(jnp.bfloat16)
    p_slab = jnp.concatenate([p_parts[k] for k in p_off], axis=1).astype(jnp.float32)
    assert w_slab.shape == (E, w_cols) and p_slab.shape == (1, p_cols)
    return w_slab, p_slab


# ----------------------------------------------------------------------------
# Wrapper: single pallas_call, whole arrays resident in VMEM (no grid).
# ----------------------------------------------------------------------------
@functools.partial(jax.jit, static_argnums=(3, 4))
def block_forward(x, w_slab, p_slab, n_heads1, n_heads2):
    B, T, E = x.shape
    w_off, _, p_off, _ = _slab_layout(E)
    kernel = functools.partial(
        _block_kernel, B=B, T=T, E=E,
        n_heads1=n_heads1, n_heads2=n_heads2, w_off=w_off, p_off=p_off)
    out2d = pl.pallas_call(
        kernel,
        out_shape=jax.ShapeDtypeStruct((B * T, E), jnp.float32),
        in_specs=[pl.BlockSpec(memory_space=pltpu.MemorySpace.VMEM)] * 3,
        out_specs=pl.BlockSpec(memory_space=pltpu.MemorySpace.VMEM),
    )(x.reshape(B * T, E), w_slab, p_slab)
    return out2d.reshape(B, T, E)


# ----------------------------------------------------------------------------
# Pure-JAX f32 reference (same math as the PyTorch module) for verification.
# ----------------------------------------------------------------------------
def block_reference(x, p, n_heads1, n_heads2):
    E = x.shape[-1]
    T = x.shape[1]

    def ln(h, w, b):
        mu = h.mean(-1, keepdims=True)
        var = ((h - mu) ** 2).mean(-1, keepdims=True)
        return (h - mu) / jnp.sqrt(var + 1e-5) * w + b

    def lin(h, w, b):
        return h @ w + b

    def mha(q, k, v, n_heads, causal):
        d = E // n_heads
        scale = 1.0 / math.sqrt(d)
        outs = []
        for h in range(n_heads):
            qh, kh, vh = (t[:, :, h * d:(h + 1) * d] for t in (q, k, v))
            s = jnp.einsum('btd,bsd->bts', qh, kh) * scale
            if causal:
                mask = jnp.tril(jnp.ones((T, T), bool))[None]
                s = jnp.where(mask, s, -1e30)
            p_ = jax.nn.softmax(s, axis=-1)
            outs.append(jnp.einsum('bts,bsd->btd', p_, vh))
        return outs[0] if n_heads == 1 else jnp.concatenate(outs, axis=-1)

    xn = ln(x, p["ln1_w"], p["ln1_b"])
    a1 = mha(lin(xn, p["q1_w"], p["q1_b"]), lin(xn, p["k1_w"], p["k1_b"]),
             lin(xn, p["v1_w"], p["v1_b"]), n_heads1, True)
    x = x + a1[0][None]

    xn = ln(x, p["ln2_w"], p["ln2_b"])
    a2 = mha(lin(xn, p["q2_w"], p["q2_b"]), lin(xn, p["k2_w"], p["k2_b"]),
             lin(xn, p["v2_w"], p["v2_b"]), n_heads2, False)
    x = x + lin(a2, p["o2_w"], p["o2_b"])

    xn = ln(x, p["ln3_w"], p["ln3_b"])
    h = lin(xn, p["f1_w"], p["f1_b"])
    h = 0.5 * h * (1.0 + jax.lax.erf(h / math.sqrt(2.0)))
    x = x + lin(h, p["f2_w"], p["f2_b"])
    return x


# ----------------------------------------------------------------------------
# Deterministic synthetic parameters (shapes follow the module __init__).
# Weights stored pre-transposed as (in, out); biases as (1, out).
# ----------------------------------------------------------------------------
def make_params(key, emb_dim):
    E = emb_dim
    H10 = 10 * E
    keys = iter(jax.random.split(key, 32))

    def w(shape, scale=0.1):
        return (scale * jax.random.normal(next(keys), shape)).astype(jnp.float32)

    p = {}
    for name in ("ln1", "ln2", "ln3"):   # PyTorch LayerNorm default init
        p[f"{name}_w"] = jnp.ones((1, E), jnp.float32)
        p[f"{name}_b"] = jnp.zeros((1, E), jnp.float32)
    for name in ("q1", "k1", "v1"):      # CausalSelfAttention q/k/v (E -> E)
        p[f"{name}_w"] = w((E, E))
        p[f"{name}_b"] = w((1, E), 0.02)
    for name in ("q2", "k2", "v2", "o2"):  # nn.MultiheadAttention in/out proj
        p[f"{name}_w"] = w((E, E))
        p[f"{name}_b"] = w((1, E), 0.02)
    p["f1_w"] = w((E, H10))
    p["f1_b"] = w((1, H10), 0.02)
    p["f2_w"] = w((H10, E))
    p["f2_b"] = w((1, E), 0.02)
    return p


if __name__ == "__main__":
    # Small config consistent with the module.
    B, T = 2, 8
    emb_dim, num_heads = 32, 4

    # Head-count logic from the PyTorch code:
    if emb_dim < num_heads:                               # Block.__init__
        num_heads = 1
    n_heads1 = 1 if num_heads < emb_dim else num_heads    # CausalSelfAttention
    n_heads2 = num_heads                                  # nn.MultiheadAttention
    assert emb_dim % n_heads1 == 0 and emb_dim % n_heads2 == 0

    root = jax.random.PRNGKey(0)
    kx, kp = jax.random.split(root)
    x = jax.random.normal(kx, (B, T, emb_dim), jnp.float32)
    params = make_params(kp, emb_dim)

    # Hoisted, one-time parameter prep (fused QKV + folded scales + bf16 slabs).
    w_slab, p_slab = pack_block_params(params, n_heads1, n_heads2)
    w_slab = jax.block_until_ready(w_slab)
    p_slab = jax.block_until_ready(p_slab)

    out = block_forward(x, w_slab, p_slab, n_heads1, n_heads2)
    out = jax.block_until_ready(out)

    ref = block_reference(x, params, n_heads1, n_heads2)
    assert out.shape == (B, T, emb_dim)
    # Tolerance relaxed vs. pure-f32: bf16 MXU operands (f32 accumulate) and the
    # EUP approx reciprocal introduce ~1e-3-scale deviations.
    err = float(jnp.max(jnp.abs(out - ref)))
    assert jnp.allclose(out, ref, atol=3e-2, rtol=3e-2), f"max abs err = {err}"

    print("KERNEL_OK")
</pallas_src>

<mosaic_0001>
module attributes {stable_mosaic.version = 11 : i64} {
  func.func @_block_kernel(%arg0: memref<16x32xf32, #tpu.memory_space<vmem>>, %arg1: memref<32x864xbf16, #tpu.memory_space<vmem>>, %arg2: memref<1x768xf32, #tpu.memory_space<vmem>>, %arg3: memref<16x32xf32, #tpu.memory_space<vmem>>) attributes {dimension_semantics = [], scalar_prefetch = 0 : i64, scratch_operands = 0 : i64, tpu.core_type = #tpu.core_type<tc>} {
    %c0 = arith.constant 0 : index
    %c0_0 = arith.constant 0 : index
    %0 = vector.load %arg0[%c0, %c0_0] : memref<16x32xf32, #tpu.memory_space<vmem>>, vector<16x32xf32>
    %1 = vector.extract_strided_slice %0 {offsets = [0, 0], sizes = [8, 32], strides = [1, 1]} : vector<16x32xf32> to vector<8x32xf32>
    %cst = arith.constant dense<0.000000e+00> : vector<8xf32>
    %2 = vector.multi_reduction <add>, %1, %cst [1] : vector<8x32xf32> to vector<8xf32>
    %3 = vector.shape_cast %2 : vector<8xf32> to vector<8x1xf32>
    %cst_1 = arith.constant 3.200000e+01 : f32
    %4 = vector.broadcast %cst_1 : f32 to vector<8x1xf32>
    %5 = arith.divf %3, %4 : vector<8x1xf32>
    %6 = vector.broadcast %5 : vector<8x1xf32> to vector<8x32xf32>
    %7 = arith.subf %1, %6 : vector<8x32xf32>
    %8 = arith.mulf %7, %7 : vector<8x32xf32>
    %cst_2 = arith.constant dense<0.000000e+00> : vector<8xf32>
    %9 = vector.multi_reduction <add>, %8, %cst_2 [1] : vector<8x32xf32> to vector<8xf32>
    %10 = vector.shape_cast %9 : vector<8xf32> to vector<8x1xf32>
    %cst_3 = arith.constant 3.200000e+01 : f32
    %11 = vector.broadcast %cst_3 : f32 to vector<8x1xf32>
    %12 = arith.divf %10, %11 : vector<8x1xf32>
    %13 = vector.broadcast %5 : vector<8x1xf32> to vector<8x32xf32>
    %14 = arith.subf %1, %13 : vector<8x32xf32>
    %cst_4 = arith.constant 9.99999974E-6 : f32
    %15 = vector.broadcast %cst_4 : f32 to vector<8x1xf32>
    %16 = arith.addf %12, %15 : vector<8x1xf32>
    %17 = math.rsqrt %16 : vector<8x1xf32>
    %18 = vector.broadcast %17 : vector<8x1xf32> to vector<8x32xf32>
    %19 = arith.mulf %14, %18 : vector<8x32xf32>
    %c0_5 = arith.constant 0 : index
    %c0_6 = arith.constant 0 : index
    %20 = vector.load %arg2[%c0_5, %c0_6] : memref<1x768xf32, #tpu.memory_space<vmem>>, vector<1x32xf32>
    %21 = vector.broadcast %20 : vector<1x32xf32> to vector<8x32xf32>
    %22 = arith.mulf %19, %21 : vector<8x32xf32>
    %c0_7 = arith.constant 0 : index
    %c32 = arith.constant 32 : index
    %23 = vector.load %arg2[%c0_7, %c32] : memref<1x768xf32, #tpu.memory_space<vmem>>, vector<1x32xf32>
    %24 = vector.broadcast %23 : vector<1x32xf32> to vector<8x32xf32>
    %25 = arith.addf %22, %24 : vector<8x32xf32>
    %26 = arith.truncf %25 : vector<8x32xf32> to vector<8x32xbf16>
    %c0_8 = arith.constant 0 : index
    %c0_9 = arith.constant 0 : index
    %27 = vector.load %arg1[%c0_8, %c0_9] : memref<32x864xbf16, #tpu.memory_space<vmem>>, vector<32x96xbf16>
    %cst_10 = arith.constant dense<0.000000e+00> : vector<8x96xf32>
    %28 = tpu.matmul %26, %27, %cst_10 {dimension_numbers = #tpu.dot_dimension_numbers<[1], [0], [0], [1], [0, 0, 1, 1], [], []>} : vector<8x32xbf16>, vector<32x96xbf16>, vector<8x96xf32> -> vector<8x96xf32>
    %c0_11 = arith.constant 0 : index
    %c192 = arith.constant 192 : index
    %29 = vector.load %arg2[%c0_11, %c192] : memref<1x768xf32, #tpu.memory_space<vmem>>, vector<1x96xf32>
    %30 = vector.broadcast %29 : vector<1x96xf32> to vector<8x96xf32>
    %31 = arith.addf %28, %30 : vector<8x96xf32>
    %32 = vector.extract_strided_slice %31 {offsets = [0, 0], sizes = [8, 32], strides = [1, 1]} : vector<8x96xf32> to vector<8x32xf32>
    %33 = vector.extract_strided_slice %31 {offsets = [0, 32], sizes = [8, 32], strides = [1, 1]} : vector<8x96xf32> to vector<8x32xf32>
    %34 = vector.extract_strided_slice %31 {offsets = [0, 64], sizes = [8, 32], strides = [1, 1]} : vector<8x96xf32> to vector<8x32xf32>
    %35 = tpu.iota {dimensions = array<i32: 0>} : vector<8x8xi32>
    %36 = tpu.iota {dimensions = array<i32: 1>} : vector<8x8xi32>
    %37 = arith.cmpi sle, %36, %35 : vector<8x8xi32>
    %38 = arith.truncf %32 : vector<8x32xf32> to vector<8x32xbf16>
    %39 = arith.truncf %33 : vector<8x32xf32> to vector<8x32xbf16>
    %cst_12 = arith.constant dense<0.000000e+00> : vector<8x8xf32>
    %40 = tpu.matmul %38, %39, %cst_12 {dimension_numbers = #tpu.dot_dimension_numbers<[1], [1], [0], [0], [0, 0, 1, 0], [], []>} : vector<8x32xbf16>, vector<8x32xbf16>, vector<8x8xf32> -> vector<8x8xf32>
    %cst_13 = arith.constant -1.000000e+30 : f32
    %41 = vector.broadcast %cst_13 : f32 to vector<8x8xf32>
    %42 = arith.select %37, %40, %41 : vector<8x8xi1>, vector<8x8xf32>
    %cst_14 = arith.constant dense<0xFF800000> : vector<8xf32>
    %43 = vector.multi_reduction <maximumf>, %42, %cst_14 [1] : vector<8x8xf32> to vector<8xf32>
    %44 = vector.shape_cast %43 : vector<8xf32> to vector<8x1xf32>
    %45 = vector.broadcast %44 : vector<8x1xf32> to vector<8x8xf32>
    %46 = arith.subf %42, %45 : vector<8x8xf32>
    %47 = math.exp %46 : vector<8x8xf32>
    %cst_15 = arith.constant dense<0.000000e+00> : vector<8xf32>
    %48 = vector.multi_reduction <add>, %47, %cst_15 [1] : vector<8x8xf32> to vector<8xf32>
    %49 = vector.shape_cast %48 : vector<8xf32> to vector<8x1xf32>
    %50 = tpu.reciprocal %49 {approx = true} : vector<8x1xf32> -> vector<8x1xf32>
    %51 = vector.broadcast %50 : vector<8x1xf32> to vector<8x8xf32>
    %52 = arith.mulf %47, %51 : vector<8x8xf32>
    %53 = arith.truncf %52 : vector<8x8xf32> to vector<8x8xbf16>
    %54 = arith.truncf %34 : vector<8x32xf32> to vector<8x32xbf16>
    %cst_16 = arith.constant dense<0.000000e+00> : vector<8x32xf32>
    %55 = tpu.matmul %53, %54, %cst_16 {dimension_numbers = #tpu.dot_dimension_numbers<[1], [0], [0], [1], [0, 0, 1, 1], [], []>} : vector<8x8xbf16>, vector<8x32xbf16>, vector<8x32xf32> -> vector<8x32xf32>
    %56 = tpu.concatenate %55, %55 in 0 : vector<8x32xf32>, vector<8x32xf32> -> vector<16x32xf32>
    %57 = arith.addf %0, %56 : vector<16x32xf32>
    %cst_17 = arith.constant dense<0.000000e+00> : vector<16xf32>
    %58 = vector.multi_reduction <add>, %57, %cst_17 [1] : vector<16x32xf32> to vector<16xf32>
    %59 = vector.shape_cast %58 : vector<16xf32> to vector<16x1xf32>
    %cst_18 = arith.constant 3.200000e+01 : f32
    %60 = vector.broadcast %cst_18 : f32 to vector<16x1xf32>
    %61 = arith.divf %59, %60 : vector<16x1xf32>
    %62 = vector.broadcast %61 : vector<16x1xf32> to vector<16x32xf32>
    %63 = arith.subf %57, %62 : vector<16x32xf32>
    %64 = arith.mulf %63, %63 : vector<16x32xf32>
    %cst_19 = arith.constant dense<0.000000e+00> : vector<16xf32>
    %65 = vector.multi_reduction <add>, %64, %cst_19 [1] : vector<16x32xf32> to vector<16xf32>
    %66 = vector.shape_cast %65 : vector<16xf32> to vector<16x1xf32>
    %cst_20 = arith.constant 3.200000e+01 : f32
    %67 = vector.broadcast %cst_20 : f32 to vector<16x1xf32>
    %68 = arith.divf %66, %67 : vector<16x1xf32>
    %69 = vector.broadcast %61 : vector<16x1xf32> to vector<16x32xf32>
    %70 = arith.subf %57, %69 : vector<16x32xf32>
    %cst_21 = arith.constant 9.99999974E-6 : f32
    %71 = vector.broadcast %cst_21 : f32 to vector<16x1xf32>
    %72 = arith.addf %68, %71 : vector<16x1xf32>
    %73 = math.rsqrt %72 : vector<16x1xf32>
    %74 = vector.broadcast %73 : vector<16x1xf32> to vector<16x32xf32>
    %75 = arith.mulf %70, %74 : vector<16x32xf32>
    %c0_22 = arith.constant 0 : index
    %c64 = arith.constant 64 : index
    %76 = vector.load %arg2[%c0_22, %c64] : memref<1x768xf32, #tpu.memory_space<vmem>>, vector<1x32xf32>
    %77 = vector.broadcast %76 : vector<1x32xf32> to vector<16x32xf32>
    %78 = arith.mulf %75, %77 : vector<16x32xf32>
    %c0_23 = arith.constant 0 : index
    %c96 = arith.constant 96 : index
    %79 = vector.load %arg2[%c0_23, %c96] : memref<1x768xf32, #tpu.memory_space<vmem>>, vector<1x32xf32>
    %80 = vector.broadcast %79 : vector<1x32xf32> to vector<16x32xf32>
    %81 = arith.addf %78, %80 : vector<16x32xf32>
    %82 = arith.truncf %81 : vector<16x32xf32> to vector<16x32xbf16>
    %c0_24 = arith.constant 0 : index
    %c96_25 = arith.constant 96 : index
    %83 = vector.load %arg1[%c0_24, %c96_25] : memref<32x864xbf16, #tpu.memory_space<vmem>>, vector<32x96xbf16>
    %cst_26 = arith.constant dense<0.000000e+00> : vector<16x96xf32>
    %84 = tpu.matmul %82, %83, %cst_26 {dimension_numbers = #tpu.dot_dimension_numbers<[1], [0], [0], [1], [0, 0, 1, 1], [], []>} : vector<16x32xbf16>, vector<32x96xbf16>, vector<16x96xf32> -> vector<16x96xf32>
    %c0_27 = arith.constant 0 : index
    %c288 = arith.constant 288 : index
    %85 = vector.load %arg2[%c0_27, %c288] : memref<1x768xf32, #tpu.memory_space<vmem>>, vector<1x96xf32>
    %86 = vector.broadcast %85 : vector<1x96xf32> to vector<16x96xf32>
    %87 = arith.addf %84, %86 : vector<16x96xf32>
    %88 = vector.extract_strided_slice %87 {offsets = [0, 0], sizes = [16, 32], strides = [1, 1]} : vector<16x96xf32> to vector<16x32xf32>
    %89 = vector.extract_strided_slice %87 {offsets = [0, 32], sizes = [16, 32], strides = [1, 1]} : vector<16x96xf32> to vector<16x32xf32>
    %90 = vector.extract_strided_slice %87 {offsets = [0, 64], sizes = [16, 32], strides = [1, 1]} : vector<16x96xf32> to vector<16x32xf32>
    %91 = vector.extract_strided_slice %88 {offsets = [0, 0], sizes = [8, 32], strides = [1, 1]} : vector<16x32xf32> to vector<8x32xf32>
    %92 = vector.extract_strided_slice %89 {offsets = [0, 0], sizes = [8, 32], strides = [1, 1]} : vector<16x32xf32> to vector<8x32xf32>
    %93 = vector.extract_strided_slice %90 {offsets = [0, 0], sizes = [8, 32], strides = [1, 1]} : vector<16x32xf32> to vector<8x32xf32>
    %94 = vector.extract_strided_slice %91 {offsets = [0, 0], sizes = [8, 8], strides = [1, 1]} : vector<8x32xf32> to vector<8x8xf32>
    %95 = vector.extract_strided_slice %92 {offsets = [0, 0], sizes = [8, 8], strides = [1, 1]} : vector<8x32xf32> to vector<8x8xf32>
    %96 = arith.truncf %94 : vector<8x8xf32> to vector<8x8xbf16>
    %97 = arith.truncf %95 : vector<8x8xf32> to vector<8x8xbf16>
    %cst_28 = arith.constant dense<0.000000e+00> : vector<8x8xf32>
    %98 = tpu.matmul %96, %97, %cst_28 {dimension_numbers = #tpu.dot_dimension_numbers<[1], [1], [0], [0], [0, 0, 1, 0], [], []>} : vector<8x8xbf16>, vector<8x8xbf16>, vector<8x8xf32> -> vector<8x8xf32>
    %cst_29 = arith.constant dense<0xFF800000> : vector<8xf32>
    %99 = vector.multi_reduction <maximumf>, %98, %cst_29 [1] : vector<8x8xf32> to vector<8xf32>
    %100 = vector.shape_cast %99 : vector<8xf32> to vector<8x1xf32>
    %101 = vector.broadcast %100 : vector<8x1xf32> to vector<8x8xf32>
    %102 = arith.subf %98, %101 : vector<8x8xf32>
    %103 = math.exp %102 : vector<8x8xf32>
    %cst_30 = arith.constant dense<0.000000e+00> : vector<8xf32>
    %104 = vector.multi_reduction <add>, %103, %cst_30 [1] : vector<8x8xf32> to vector<8xf32>
    %105 = vector.shape_cast %104 : vector<8xf32> to vector<8x1xf32>
    %106 = tpu.reciprocal %105 {approx = true} : vector<8x1xf32> -> vector<8x1xf32>
    %107 = vector.broadcast %106 : vector<8x1xf32> to vector<8x8xf32>
    %108 = arith.mulf %103, %107 : vector<8x8xf32>
    %109 = arith.truncf %108 : vector<8x8xf32> to vector<8x8xbf16>
    %110 = vector.extract_strided_slice %93 {offsets = [0, 0], sizes = [8, 8], strides = [1, 1]} : vector<8x32xf32> to vector<8x8xf32>
    %111 = arith.truncf %110 : vector<8x8xf32> to vector<8x8xbf16>
    %cst_31 = arith.constant dense<0.000000e+00> : vector<8x8xf32>
    %112 = tpu.matmul %109, %111, %cst_31 {dimension_numbers = #tpu.dot_dimension_numbers<[1], [0], [0], [1], [0, 0, 1, 1], [], []>} : vector<8x8xbf16>, vector<8x8xbf16>, vector<8x8xf32> -> vector<8x8xf32>
    %113 = vector.extract_strided_slice %91 {offsets = [0, 8], sizes = [8, 8], strides = [1, 1]} : vector<8x32xf32> to vector<8x8xf32>
    %114 = vector.extract_strided_slice %92 {offsets = [0, 8], sizes = [8, 8], strides = [1, 1]} : vector<8x32xf32> to vector<8x8xf32>
    %115 = arith.truncf %113 : vector<8x8xf32> to vector<8x8xbf16>
    %116 = arith.truncf %114 : vector<8x8xf32> to vector<8x8xbf16>
    %cst_32 = arith.constant dense<0.000000e+00> : vector<8x8xf32>
    %117 = tpu.matmul %115, %116, %cst_32 {dimension_numbers = #tpu.dot_dimension_numbers<[1], [1], [0], [0], [0, 0, 1, 0], [], []>} : vector<8x8xbf16>, vector<8x8xbf16>, vector<8x8xf32> -> vector<8x8xf32>
    %cst_33 = arith.constant dense<0xFF800000> : vector<8xf32>
    %118 = vector.multi_reduction <maximumf>, %117, %cst_33 [1] : vector<8x8xf32> to vector<8xf32>
    %119 = vector.shape_cast %118 : vector<8xf32> to vector<8x1xf32>
    %120 = vector.broadcast %119 : vector<8x1xf32> to vector<8x8xf32>
    %121 = arith.subf %117, %120 : vector<8x8xf32>
    %122 = math.exp %121 : vector<8x8xf32>
    %cst_34 = arith.constant dense<0.000000e+00> : vector<8xf32>
    %123 = vector.multi_reduction <add>, %122, %cst_34 [1] : vector<8x8xf32> to vector<8xf32>
    %124 = vector.shape_cast %123 : vector<8xf32> to vector<8x1xf32>
    %125 = tpu.reciprocal %124 {approx = true} : vector<8x1xf32> -> vector<8x1xf32>
    %126 = vector.broadcast %125 : vector<8x1xf32> to vector<8x8xf32>
    %127 = arith.mulf %122, %126 : vector<8x8xf32>
    %128 = arith.truncf %127 : vector<8x8xf32> to vector<8x8xbf16>
    %129 = vector.extract_strided_slice %93 {offsets = [0, 8], sizes = [8, 8], strides = [1, 1]} : vector<8x32xf32> to vector<8x8xf32>
    %130 = arith.truncf %129 : vector<8x8xf32> to vector<8x8xbf16>
    %cst_35 = arith.constant dense<0.000000e+00> : vector<8x8xf32>
    %131 = tpu.matmul %128, %130, %cst_35 {dimension_numbers = #tpu.dot_dimension_numbers<[1], [0], [0], [1], [0, 0, 1, 1], [], []>} : vector<8x8xbf16>, vector<8x8xbf16>, vector<8x8xf32> -> vector<8x8xf32>
    %132 = vector.extract_strided_slice %91 {offsets = [0, 16], sizes = [8, 8], strides = [1, 1]} : vector<8x32xf32> to vector<8x8xf32>
    %133 = vector.extract_strided_slice %92 {offsets = [0, 16], sizes = [8, 8], strides = [1, 1]} : vector<8x32xf32> to vector<8x8xf32>
    %134 = arith.truncf %132 : vector<8x8xf32> to vector<8x8xbf16>
    %135 = arith.truncf %133 : vector<8x8xf32> to vector<8x8xbf16>
    %cst_36 = arith.constant dense<0.000000e+00> : vector<8x8xf32>
    %136 = tpu.matmul %134, %135, %cst_36 {dimension_numbers = #tpu.dot_dimension_numbers<[1], [1], [0], [0], [0, 0, 1, 0], [], []>} : vector<8x8xbf16>, vector<8x8xbf16>, vector<8x8xf32> -> vector<8x8xf32>
    %cst_37 = arith.constant dense<0xFF800000> : vector<8xf32>
    %137 = vector.multi_reduction <maximumf>, %136, %cst_37 [1] : vector<8x8xf32> to vector<8xf32>
    %138 = vector.shape_cast %137 : vector<8xf32> to vector<8x1xf32>
    %139 = vector.broadcast %138 : vector<8x1xf32> to vector<8x8xf32>
    %140 = arith.subf %136, %139 : vector<8x8xf32>
    %141 = math.exp %140 : vector<8x8xf32>
    %cst_38 = arith.constant dense<0.000000e+00> : vector<8xf32>
    %142 = vector.multi_reduction <add>, %141, %cst_38 [1] : vector<8x8xf32> to vector<8xf32>
    %143 = vector.shape_cast %142 : vector<8xf32> to vector<8x1xf32>
    %144 = tpu.reciprocal %143 {approx = true} : vector<8x1xf32> -> vector<8x1xf32>
    %145 = vector.broadcast %144 : vector<8x1xf32> to vector<8x8xf32>
    %146 = arith.mulf %141, %145 : vector<8x8xf32>
    %147 = arith.truncf %146 : vector<8x8xf32> to vector<8x8xbf16>
    %148 = vector.extract_strided_slice %93 {offsets = [0, 16], sizes = [8, 8], strides = [1, 1]} : vector<8x32xf32> to vector<8x8xf32>
    %149 = arith.truncf %148 : vector<8x8xf32> to vector<8x8xbf16>
    %cst_39 = arith.constant dense<0.000000e+00> : vector<8x8xf32>
    %150 = tpu.matmul %147, %149, %cst_39 {dimension_numbers = #tpu.dot_dimension_numbers<[1], [0], [0], [1], [0, 0, 1, 1], [], []>} : vector<8x8xbf16>, vector<8x8xbf16>, vector<8x8xf32> -> vector<8x8xf32>
    %151 = vector.extract_strided_slice %91 {offsets = [0, 24], sizes = [8, 8], strides = [1, 1]} : vector<8x32xf32> to vector<8x8xf32>
    %152 = vector.extract_strided_slice %92 {offsets = [0, 24], sizes = [8, 8], strides = [1, 1]} : vector<8x32xf32> to vector<8x8xf32>
    %153 = arith.truncf %151 : vector<8x8xf32> to vector<8x8xbf16>
    %154 = arith.truncf %152 : vector<8x8xf32> to vector<8x8xbf16>
    %cst_40 = arith.constant dense<0.000000e+00> : vector<8x8xf32>
    %155 = tpu.matmul %153, %154, %cst_40 {dimension_numbers = #tpu.dot_dimension_numbers<[1], [1], [0], [0], [0, 0, 1, 0], [], []>} : vector<8x8xbf16>, vector<8x8xbf16>, vector<8x8xf32> -> vector<8x8xf32>
    %cst_41 = arith.constant dense<0xFF800000> : vector<8xf32>
    %156 = vector.multi_reduction <maximumf>, %155, %cst_41 [1] : vector<8x8xf32> to vector<8xf32>
    %157 = vector.shape_cast %156 : vector<8xf32> to vector<8x1xf32>
    %158 = vector.broadcast %157 : vector<8x1xf32> to vector<8x8xf32>
    %159 = arith.subf %155, %158 : vector<8x8xf32>
    %160 = math.exp %159 : vector<8x8xf32>
    %cst_42 = arith.constant dense<0.000000e+00> : vector<8xf32>
    %161 = vector.multi_reduction <add>, %160, %cst_42 [1] : vector<8x8xf32> to vector<8xf32>
    %162 = vector.shape_cast %161 : vector<8xf32> to vector<8x1xf32>
    %163 = tpu.reciprocal %162 {approx = true} : vector<8x1xf32> -> vector<8x1xf32>
    %164 = vector.broadcast %163 : vector<8x1xf32> to vector<8x8xf32>
    %165 = arith.mulf %160, %164 : vector<8x8xf32>
    %166 = arith.truncf %165 : vector<8x8xf32> to vector<8x8xbf16>
    %167 = vector.extract_strided_slice %93 {offsets = [0, 24], sizes = [8, 8], strides = [1, 1]} : vector<8x32xf32> to vector<8x8xf32>
    %168 = arith.truncf %167 : vector<8x8xf32> to vector<8x8xbf16>
    %cst_43 = arith.constant dense<0.000000e+00> : vector<8x8xf32>
    %169 = tpu.matmul %166, %168, %cst_43 {dimension_numbers = #tpu.dot_dimension_numbers<[1], [0], [0], [1], [0, 0, 1, 1], [], []>} : vector<8x8xbf16>, vector<8x8xbf16>, vector<8x8xf32> -> vector<8x8xf32>
    %170 = tpu.concatenate %112, %131, %150, %169 in 1 : vector<8x8xf32>, vector<8x8xf32>, vector<8x8xf32>, vector<8x8xf32> -> vector<8x32xf32>
    %171 = vector.extract_strided_slice %88 {offsets = [8, 0], sizes = [8, 32], strides = [1, 1]} : vector<16x32xf32> to vector<8x32xf32>
    %172 = vector.extract_strided_slice %89 {offsets = [8, 0], sizes = [8, 32], strides = [1, 1]} : vector<16x32xf32> to vector<8x32xf32>
    %173 = vector.extract_strided_slice %90 {offsets = [8, 0], sizes = [8, 32], strides = [1, 1]} : vector<16x32xf32> to vector<8x32xf32>
    %174 = vector.extract_strided_slice %171 {offsets = [0, 0], sizes = [8, 8], strides = [1, 1]} : vector<8x32xf32> to vector<8x8xf32>
    %175 = vector.extract_strided_slice %172 {offsets = [0, 0], sizes = [8, 8], strides = [1, 1]} : vector<8x32xf32> to vector<8x8xf32>
    %176 = arith.truncf %174 : vector<8x8xf32> to vector<8x8xbf16>
    %177 = arith.truncf %175 : vector<8x8xf32> to vector<8x8xbf16>
    %cst_44 = arith.constant dense<0.000000e+00> : vector<8x8xf32>
    %178 = tpu.matmul %176, %177, %cst_44 {dimension_numbers = #tpu.dot_dimension_numbers<[1], [1], [0], [0], [0, 0, 1, 0], [], []>} : vector<8x8xbf16>, vector<8x8xbf16>, vector<8x8xf32> -> vector<8x8xf32>
    %cst_45 = arith.constant dense<0xFF800000> : vector<8xf32>
    %179 = vector.multi_reduction <maximumf>, %178, %cst_45 [1] : vector<8x8xf32> to vector<8xf32>
    %180 = vector.shape_cast %179 : vector<8xf32> to vector<8x1xf32>
    %181 = vector.broadcast %180 : vector<8x1xf32> to vector<8x8xf32>
    %182 = arith.subf %178, %181 : vector<8x8xf32>
    %183 = math.exp %182 : vector<8x8xf32>
    %cst_46 = arith.constant dense<0.000000e+00> : vector<8xf32>
    %184 = vector.multi_reduction <add>, %183, %cst_46 [1] : vector<8x8xf32> to vector<8xf32>
    %185 = vector.shape_cast %184 : vector<8xf32> to vector<8x1xf32>
    %186 = tpu.reciprocal %185 {approx = true} : vector<8x1xf32> -> vector<8x1xf32>
    %187 = vector.broadcast %186 : vector<8x1xf32> to vector<8x8xf32>
    %188 = arith.mulf %183, %187 : vector<8x8xf32>
    %189 = arith.truncf %188 : vector<8x8xf32> to vector<8x8xbf16>
    %190 = vector.extract_strided_slice %173 {offsets = [0, 0], sizes = [8, 8], strides = [1, 1]} : vector<8x32xf32> to vector<8x8xf32>
    %191 = arith.truncf %190 : vector<8x8xf32> to vector<8x8xbf16>
    %cst_47 = arith.constant dense<0.000000e+00> : vector<8x8xf32>
    %192 = tpu.matmul %189, %191, %cst_47 {dimension_numbers = #tpu.dot_dimension_numbers<[1], [0], [0], [1], [0, 0, 1, 1], [], []>} : vector<8x8xbf16>, vector<8x8xbf16>, vector<8x8xf32> -> vector<8x8xf32>
    %193 = vector.extract_strided_slice %171 {offsets = [0, 8], sizes = [8, 8], strides = [1, 1]} : vector<8x32xf32> to vector<8x8xf32>
    %194 = vector.extract_strided_slice %172 {offsets = [0, 8], sizes = [8, 8], strides = [1, 1]} : vector<8x32xf32> to vector<8x8xf32>
    %195 = arith.truncf %193 : vector<8x8xf32> to vector<8x8xbf16>
    %196 = arith.truncf %194 : vector<8x8xf32> to vector<8x8xbf16>
    %cst_48 = arith.constant dense<0.000000e+00> : vector<8x8xf32>
    %197 = tpu.matmul %195, %196, %cst_48 {dimension_numbers = #tpu.dot_dimension_numbers<[1], [1], [0], [0], [0, 0, 1, 0], [], []>} : vector<8x8xbf16>, vector<8x8xbf16>, vector<8x8xf32> -> vector<8x8xf32>
    %cst_49 = arith.constant dense<0xFF800000> : vector<8xf32>
    %198 = vector.multi_reduction <maximumf>, %197, %cst_49 [1] : vector<8x8xf32> to vector<8xf32>
    %199 = vector.shape_cast %198 : vector<8xf32> to vector<8x1xf32>
    %200 = vector.broadcast %199 : vector<8x1xf32> to vector<8x8xf32>
    %201 = arith.subf %197, %200 : vector<8x8xf32>
    %202 = math.exp %201 : vector<8x8xf32>
    %cst_50 = arith.constant dense<0.000000e+00> : vector<8xf32>
    %203 = vector.multi_reduction <add>, %202, %cst_50 [1] : vector<8x8xf32> to vector<8xf32>
    %204 = vector.shape_cast %203 : vector<8xf32> to vector<8x1xf32>
    %205 = tpu.reciprocal %204 {approx = true} : vector<8x1xf32> -> vector<8x1xf32>
    %206 = vector.broadcast %205 : vector<8x1xf32> to vector<8x8xf32>
    %207 = arith.mulf %202, %206 : vector<8x8xf32>
    %208 = arith.truncf %207 : vector<8x8xf32> to vector<8x8xbf16>
    %209 = vector.extract_strided_slice %173 {offsets = [0, 8], sizes = [8, 8], strides = [1, 1]} : vector<8x32xf32> to vector<8x8xf32>
    %210 = arith.truncf %209 : vector<8x8xf32> to vector<8x8xbf16>
    %cst_51 = arith.constant dense<0.000000e+00> : vector<8x8xf32>
    %211 = tpu.matmul %208, %210, %cst_51 {dimension_numbers = #tpu.dot_dimension_numbers<[1], [0], [0], [1], [0, 0, 1, 1], [], []>} : vector<8x8xbf16>, vector<8x8xbf16>, vector<8x8xf32> -> vector<8x8xf32>
    %212 = vector.extract_strided_slice %171 {offsets = [0, 16], sizes = [8, 8], strides = [1, 1]} : vector<8x32xf32> to vector<8x8xf32>
    %213 = vector.extract_strided_slice %172 {offsets = [0, 16], sizes = [8, 8], strides = [1, 1]} : vector<8x32xf32> to vector<8x8xf32>
    %214 = arith.truncf %212 : vector<8x8xf32> to vector<8x8xbf16>
    %215 = arith.truncf %213 : vector<8x8xf32> to vector<8x8xbf16>
    %cst_52 = arith.constant dense<0.000000e+00> : vector<8x8xf32>
    %216 = tpu.matmul %214, %215, %cst_52 {dimension_numbers = #tpu.dot_dimension_numbers<[1], [1], [0], [0], [0, 0, 1, 0], [], []>} : vector<8x8xbf16>, vector<8x8xbf16>, vector<8x8xf32> -> vector<8x8xf32>
    %cst_53 = arith.constant dense<0xFF800000> : vector<8xf32>
    %217 = vector.multi_reduction <maximumf>, %216, %cst_53 [1] : vector<8x8xf32> to vector<8xf32>
    %218 = vector.shape_cast %217 : vector<8xf32> to vector<8x1xf32>
    %219 = vector.broadcast %218 : vector<8x1xf32> to vector<8x8xf32>
    %220 = arith.subf %216, %219 : vector<8x8xf32>
    %221 = math.exp %220 : vector<8x8xf32>
    %cst_54 = arith.constant dense<0.000000e+00> : vector<8xf32>
    %222 = vector.multi_reduction <add>, %221, %cst_54 [1] : vector<8x8xf32> to vector<8xf32>
    %223 = vector.shape_cast %222 : vector<8xf32> to vector<8x1xf32>
    %224 = tpu.reciprocal %223 {approx = true} : vector<8x1xf32> -> vector<8x1xf32>
    %225 = vector.broadcast %224 : vector<8x1xf32> to vector<8x8xf32>
    %226 = arith.mulf %221, %225 : vector<8x8xf32>
    %227 = arith.truncf %226 : vector<8x8xf32> to vector<8x8xbf16>
    %228 = vector.extract_strided_slice %173 {offsets = [0, 16], sizes = [8, 8], strides = [1, 1]} : vector<8x32xf32> to vector<8x8xf32>
    %229 = arith.truncf %228 : vector<8x8xf32> to vector<8x8xbf16>
    %cst_55 = arith.constant dense<0.000000e+00> : vector<8x8xf32>
    %230 = tpu.matmul %227, %229, %cst_55 {dimension_numbers = #tpu.dot_dimension_numbers<[1], [0], [0], [1], [0, 0, 1, 1], [], []>} : vector<8x8xbf16>, vector<8x8xbf16>, vector<8x8xf32> -> vector<8x8xf32>
    %231 = vector.extract_strided_slice %171 {offsets = [0, 24], sizes = [8, 8], strides = [1, 1]} : vector<8x32xf32> to vector<8x8xf32>
    %232 = vector.extract_strided_slice %172 {offsets = [0, 24], sizes = [8, 8], strides = [1, 1]} : vector<8x32xf32> to vector<8x8xf32>
    %233 = arith.truncf %231 : vector<8x8xf32> to vector<8x8xbf16>
    %234 = arith.truncf %232 : vector<8x8xf32> to vector<8x8xbf16>
    %cst_56 = arith.constant dense<0.000000e+00> : vector<8x8xf32>
    %235 = tpu.matmul %233, %234, %cst_56 {dimension_numbers = #tpu.dot_dimension_numbers<[1], [1], [0], [0], [0, 0, 1, 0], [], []>} : vector<8x8xbf16>, vector<8x8xbf16>, vector<8x8xf32> -> vector<8x8xf32>
    %cst_57 = arith.constant dense<0xFF800000> : vector<8xf32>
    %236 = vector.multi_reduction <maximumf>, %235, %cst_57 [1] : vector<8x8xf32> to vector<8xf32>
    %237 = vector.shape_cast %236 : vector<8xf32> to vector<8x1xf32>
    %238 = vector.broadcast %237 : vector<8x1xf32> to vector<8x8xf32>
    %239 = arith.subf %235, %238 : vector<8x8xf32>
    %240 = math.exp %239 : vector<8x8xf32>
    %cst_58 = arith.constant dense<0.000000e+00> : vector<8xf32>
    %241 = vector.multi_reduction <add>, %240, %cst_58 [1] : vector<8x8xf32> to vector<8xf32>
    %242 = vector.shape_cast %241 : vector<8xf32> to vector<8x1xf32>
    %243 = tpu.reciprocal %242 {approx = true} : vector<8x1xf32> -> vector<8x1xf32>
    %244 = vector.broadcast %243 : vector<8x1xf32> to vector<8x8xf32>
    %245 = arith.mulf %240, %244 : vector<8x8xf32>
    %246 = arith.truncf %245 : vector<8x8xf32> to vector<8x8xbf16>
    %247 = vector.extract_strided_slice %173 {offsets = [0, 24], sizes = [8, 8], strides = [1, 1]} : vector<8x32xf32> to vector<8x8xf32>
    %248 = arith.truncf %247 : vector<8x8xf32> to vector<8x8xbf16>
    %cst_59 = arith.constant dense<0.000000e+00> : vector<8x8xf32>
    %249 = tpu.matmul %246, %248, %cst_59 {dimension_numbers = #tpu.dot_dimension_numbers<[1], [0], [0], [1], [0, 0, 1, 1], [], []>} : vector<8x8xbf16>, vector<8x8xbf16>, vector<8x8xf32> -> vector<8x8xf32>
    %250 = tpu.concatenate %192, %211, %230, %249 in 1 : vector<8x8xf32>, vector<8x8xf32>, vector<8x8xf32>, vector<8x8xf32> -> vector<8x32xf32>
    %251 = tpu.concatenate %170, %250 in 0 : vector<8x32xf32>, vector<8x32xf32> -> vector<16x32xf32>
    %252 = arith.truncf %251 : vector<16x32xf32> to vector<16x32xbf16>
    %c0_60 = arith.constant 0 : index
    %c192_61 = arith.constant 192 : index
    %253 = vector.load %arg1[%c0_60, %c192_61] : memref<32x864xbf16, #tpu.memory_space<vmem>>, vector<32x32xbf16>
    %cst_62 = arith.constant dense<0.000000e+00> : vector<16x32xf32>
    %254 = tpu.matmul %252, %253, %cst_62 {dimension_numbers = #tpu.dot_dimension_numbers<[1], [0], [0], [1], [0, 0, 1, 1], [], []>} : vector<16x32xbf16>, vector<32x32xbf16>, vector<16x32xf32> -> vector<16x32xf32>
    %c0_63 = arith.constant 0 : index
    %c384 = arith.constant 384 : index
    %255 = vector.load %arg2[%c0_63, %c384] : memref<1x768xf32, #tpu.memory_space<vmem>>, vector<1x32xf32>
    %256 = vector.broadcast %255 : vector<1x32xf32> to vector<16x32xf32>
    %257 = arith.addf %254, %256 : vector<16x32xf32>
    %258 = arith.addf %57, %257 : vector<16x32xf32>
    %cst_64 = arith.constant dense<0.000000e+00> : vector<16xf32>
    %259 = vector.multi_reduction <add>, %258, %cst_64 [1] : vector<16x32xf32> to vector<16xf32>
    %260 = vector.shape_cast %259 : vector<16xf32> to vector<16x1xf32>
    %cst_65 = arith.constant 3.200000e+01 : f32
    %261 = vector.broadcast %cst_65 : f32 to vector<16x1xf32>
    %262 = arith.divf %260, %261 : vector<16x1xf32>
    %263 = vector.broadcast %262 : vector<16x1xf32> to vector<16x32xf32>
    %264 = arith.subf %258, %263 : vector<16x32xf32>
    %265 = arith.mulf %264, %264 : vector<16x32xf32>
    %cst_66 = arith.constant dense<0.000000e+00> : vector<16xf32>
    %266 = vector.multi_reduction <add>, %265, %cst_66 [1] : vector<16x32xf32> to vector<16xf32>
    %267 = vector.shape_cast %266 : vector<16xf32> to vector<16x1xf32>
    %cst_67 = arith.constant 3.200000e+01 : f32
    %268 = vector.broadcast %cst_67 : f32 to vector<16x1xf32>
    %269 = arith.divf %267, %268 : vector<16x1xf32>
    %270 = vector.broadcast %262 : vector<16x1xf32> to vector<16x32xf32>
    %271 = arith.subf %258, %270 : vector<16x32xf32>
    %cst_68 = arith.constant 9.99999974E-6 : f32
    %272 = vector.broadcast %cst_68 : f32 to vector<16x1xf32>
    %273 = arith.addf %269, %272 : vector<16x1xf32>
    %274 = math.rsqrt %273 : vector<16x1xf32>
    %275 = vector.broadcast %274 : vector<16x1xf32> to vector<16x32xf32>
    %276 = arith.mulf %271, %275 : vector<16x32xf32>
    %c0_69 = arith.constant 0 : index
    %c128 = arith.constant 128 : index
    %277 = vector.load %arg2[%c0_69, %c128] : memref<1x768xf32, #tpu.memory_space<vmem>>, vector<1x32xf32>
    %278 = vector.broadcast %277 : vector<1x32xf32> to vector<16x32xf32>
    %279 = arith.mulf %276, %278 : vector<16x32xf32>
    %c0_70 = arith.constant 0 : index
    %c160 = arith.constant 160 : index
    %280 = vector.load %arg2[%c0_70, %c160] : memref<1x768xf32, #tpu.memory_space<vmem>>, vector<1x32xf32>
    %281 = vector.broadcast %280 : vector<1x32xf32> to vector<16x32xf32>
    %282 = arith.addf %279, %281 : vector<16x32xf32>
    %283 = arith.truncf %282 : vector<16x32xf32> to vector<16x32xbf16>
    %c0_71 = arith.constant 0 : index
    %c224 = arith.constant 224 : index
    %284 = vector.load %arg1[%c0_71, %c224] : memref<32x864xbf16, #tpu.memory_space<vmem>>, vector<32x320xbf16>
    %cst_72 = arith.constant dense<0.000000e+00> : vector<16x320xf32>
    %285 = tpu.matmul %283, %284, %cst_72 {dimension_numbers = #tpu.dot_dimension_numbers<[1], [0], [0], [1], [0, 0, 1, 1], [], []>} : vector<16x32xbf16>, vector<32x320xbf16>, vector<16x320xf32> -> vector<16x320xf32>
    %c0_73 = arith.constant 0 : index
    %c416 = arith.constant 416 : index
    %286 = vector.load %arg2[%c0_73, %c416] : memref<1x768xf32, #tpu.memory_space<vmem>>, vector<1x320xf32>
    %287 = vector.broadcast %286 : vector<1x320xf32> to vector<16x320xf32>
    %288 = arith.addf %285, %287 : vector<16x320xf32>
    %cst_74 = arith.constant 5.000000e-01 : f32
    %289 = vector.broadcast %cst_74 : f32 to vector<16x320xf32>
    %290 = arith.mulf %289, %288 : vector<16x320xf32>
    %cst_75 = arith.constant 0.707106769 : f32
    %291 = vector.broadcast %cst_75 : f32 to vector<16x320xf32>
    %292 = arith.mulf %288, %291 : vector<16x320xf32>
    %293 = math.absf %292 : vector<16x320xf32>
    %cst_76 = arith.constant 0.327591091 : f32
    %294 = vector.broadcast %cst_76 : f32 to vector<16x320xf32>
    %295 = arith.mulf %294, %293 : vector<16x320xf32>
    %cst_77 = arith.constant 1.000000e+00 : f32
    %296 = vector.broadcast %cst_77 : f32 to vector<16x320xf32>
    %297 = arith.addf %296, %295 : vector<16x320xf32>
    %cst_78 = arith.constant 1.000000e+00 : f32
    %298 = vector.broadcast %cst_78 : f32 to vector<16x320xf32>
    %299 = arith.divf %298, %297 : vector<16x320xf32>
    %cst_79 = arith.constant 1.06140542 : f32
    %300 = vector.broadcast %cst_79 : f32 to vector<16x320xf32>
    %301 = arith.mulf %300, %299 : vector<16x320xf32>
    %cst_80 = arith.constant -1.45315206 : f32
    %302 = vector.broadcast %cst_80 : f32 to vector<16x320xf32>
    %303 = arith.addf %301, %302 : vector<16x320xf32>
    %304 = arith.mulf %303, %299 : vector<16x320xf32>
    %cst_81 = arith.constant 1.42141378 : f32
    %305 = vector.broadcast %cst_81 : f32 to vector<16x320xf32>
    %306 = arith.addf %304, %305 : vector<16x320xf32>
    %307 = arith.mulf %306, %299 : vector<16x320xf32>
    %cst_82 = arith.constant -0.284496725 : f32
    %308 = vector.broadcast %cst_82 : f32 to vector<16x320xf32>
    %309 = arith.addf %307, %308 : vector<16x320xf32>
    %310 = arith.mulf %309, %299 : vector<16x320xf32>
    %cst_83 = arith.constant 0.254829586 : f32
    %311 = vector.broadcast %cst_83 : f32 to vector<16x320xf32>
    %312 = arith.addf %310, %311 : vector<16x320xf32>
    %313 = arith.mulf %312, %299 : vector<16x320xf32>
    %cst_84 = arith.constant 0.000000e+00 : f32
    %314 = vector.broadcast %cst_84 : f32 to vector<16x320xf32>
    %315 = arith.subf %314, %293 : vector<16x320xf32>
    %316 = arith.mulf %315, %293 : vector<16x320xf32>
    %317 = math.exp %316 : vector<16x320xf32>
    %318 = arith.mulf %313, %317 : vector<16x320xf32>
    %cst_85 = arith.constant 1.000000e+00 : f32
    %319 = vector.broadcast %cst_85 : f32 to vector<16x320xf32>
    %320 = arith.subf %319, %318 : vector<16x320xf32>
    %cst_86 = arith.constant 0.000000e+00 : f32
    %321 = vector.broadcast %cst_86 : f32 to vector<16x320xf32>
    %322 = arith.cmpf oge, %292, %321 : vector<16x320xf32>
    %cst_87 = arith.constant 0.000000e+00 : f32
    %323 = vector.broadcast %cst_87 : f32 to vector<16x320xf32>
    %324 = arith.subf %323, %320 : vector<16x320xf32>
    %325 = arith.select %322, %320, %324 : vector<16x320xi1>, vector<16x320xf32>
    %cst_88 = arith.constant 1.000000e+00 : f32
    %326 = vector.broadcast %cst_88 : f32 to vector<16x320xf32>
    %327 = arith.addf %326, %325 : vector<16x320xf32>
    %328 = arith.mulf %290, %327 : vector<16x320xf32>
    %c0_89 = arith.constant 0 : index
    %c544 = arith.constant 544 : index
    %329 = vector.load %arg1[%c0_89, %c544] : memref<32x864xbf16, #tpu.memory_space<vmem>>, vector<32x320xbf16>
    %330 = arith.truncf %328 : vector<16x320xf32> to vector<16x320xbf16>
    %cst_90 = arith.constant dense<0.000000e+00> : vector<16x32xf32>
    %331 = tpu.matmul %330, %329, %cst_90 {dimension_numbers = #tpu.dot_dimension_numbers<[1], [1], [0], [0], [0, 0, 1, 0], [], []>} : vector<16x320xbf16>, vector<32x320xbf16>, vector<16x32xf32> -> vector<16x32xf32>
    %c0_91 = arith.constant 0 : index
    %c736 = arith.constant 736 : index
    %332 = vector.load %arg2[%c0_91, %c736] : memref<1x768xf32, #tpu.memory_space<vmem>>, vector<1x32xf32>
    %333 = vector.broadcast %332 : vector<1x32xf32> to vector<16x32xf32>
    %334 = arith.addf %331, %333 : vector<16x32xf32>
    %335 = arith.addf %258, %334 : vector<16x32xf32>
    %c0_92 = arith.constant 0 : index
    %c0_93 = arith.constant 0 : index
    %336 = vector.load %arg3[%c0_92, %c0_93] : memref<16x32xf32, #tpu.memory_space<vmem>>, vector<16x32xf32>
    tpu.vector_store %arg3[%c0_92, %c0_93], %335 {strides = array<i32>} : memref<16x32xf32, #tpu.memory_space<vmem>>, vector<16x32xf32>,
    return
  }
}

</mosaic_0001>

<bundles_post_ra>
// kernel: block_forward.1
= control target key start
LH: loop header
LB: loop body
LE: loop exit
PB: predicated region body
PF: predicated region fallthrough
CT: control target
= control target key end

     0   :  { %8 = vsyncpa [#allocation3], 0  ;;  %s2912_s0 = inlined_call_operand.hbm [shape: f32[16,32], index: 0, kind: input, shape index: {}]   ;;  %s2913_s1 = inlined_call_operand.hbm [shape: bf16[32,864], index: 1, kind: input, shape index: {}]   ;;  %s2914_s2 = inlined_call_operand.vmem [shape: f32[1,768], index: 2, kind: input, shape index: {}]   ;;  %s2915_s3 = inlined_call_operand.hbm [shape: f32[16,32], index: 3, kind: output, shape index: {}]  }
   0x1   :  { %9 = vsyncpa [#allocation6], 0 }
   0x2   :  { %10 = vsyncpa [#allocation4], 0  ;;  %s2404_s12 = smov [#allocation2]   ;;  %s2332_s16 = scalar_lea.hbm %s2912_s0, 256 }
   0x3   :  { %s16_s13 = sshll.u32 %s2404_s12, 4  ;;  %p2333_p0 = scmp.ne.s32.totalorder %s2912_s0, %s2332_s16  ;;  %s17_s13 = int_to_ptr.vmem [resolvable:$true] %s16_s13 }
   0x4   :  { %p2336_p1 = scmp.lt.u32.totalorder %s2332_s16, %s2912_s0 }
   0x6   :  { %p2338_p2 = pnand %p2336_p1, %p2333_p0 }
   0x8   :  { %2341 = shalt.err (!%p2338_p2)
}
   0x9   :  { %s2342_s21 = scalar_lea.vmem %s17_s13, 256  ;;  %p2347_p4 = scmp.lt.s32.totalorder %s17_s13, %s17_s13 }
   0xa   :  { %p2343_p3 = scmp.ne.s32.totalorder %s17_s13, %s2342_s21  ;;  %p2348_p5 = scmp.lt.s32.totalorder %s2342_s21, %s2342_s21 }
   0xc   :  { %p2349_p6 = por %p2348_p5, %p2347_p4 }
   0xe   :  { %p2350_p7 = pnand %p2349_p6, %p2343_p3 }
  0x10   :  { %2353 = shalt.err (!%p2350_p7)
}
  0x11   :  { %s2405_s22 = smov 128   ;;  %s2406_s23 = smov 8  }
  0x12   :  { %22 = dma.hbm_to_vmem [thread:$0]  %s2912_s0, 256, %s17_s13, [#allocation3], %s2405_s22, %s2405_s22, %s2406_s23  }
  0x13   :  { %s2407_s26 = smov [#allocation5]   ;;  %s2354_s30 = scalar_lea.hbm %s2913_s1, 1792 }
  0x14   :  { %s28_s27 = sshll.u32 %s2407_s26, 4  ;;  %p2355_p8 = scmp.ne.s32.totalorder %s2913_s1, %s2354_s30  ;;  %s29_s27 = int_to_ptr.vmem [resolvable:$true] %s28_s27 }
  0x15   :  { %p2358_p9 = scmp.lt.u32.totalorder %s2354_s30, %s2913_s1 }
  0x17   :  { %p2360_p10 = pnand %p2358_p9, %p2355_p8 }
  0x19   :  { %2363 = shalt.err (!%p2360_p10)
}
  0x1a   :  { %s2364_s8 = scalar_lea.vmem %s29_s27, 1792  ;;  %p2369_p12 = scmp.lt.s32.totalorder %s29_s27, %s29_s27 }
  0x1b   :  { %p2365_p11 = scmp.ne.s32.totalorder %s29_s27, %s2364_s8  ;;  %p2370_p13 = scmp.lt.s32.totalorder %s2364_s8, %s2364_s8 }
  0x1d   :  { %p2371_p0 = por %p2370_p13, %p2369_p12 }
  0x1f   :  { %p2372_p1 = pnand %p2371_p0, %p2365_p11 }
  0x21   :  { %2375 = shalt.err (!%p2372_p1)
}
  0x22   :  { %s2408_s0 = smov 448   ;;  %s2409_s9 = smov 28  }
  0x23   :  { %34 = dma.hbm_to_vmem [thread:$0]  %s2913_s1, 1792, %s29_s27, [#allocation6], %s2408_s0, %s2408_s0, %s2409_s9  }
  0x24   :  { %2398 = dma.done.wait [#allocation3], 256  }
  0x25   :  { %2399 = vsyncadd [#allocation3], 4294967040 }
  0x26   :  { %2400 = dma.done.wait [#allocation6], 1792  }
  0x27   :  { %2401 = vsyncadd [#allocation6], 4294965504  ;;  %vm46_vm0 = vcmask 261120   ;;  %v2475_v0 = vld [vmem:[#allocation2] sm:$0xff]  ;;  %s2410_s14 = smov 96   ;;  %v2411_v9 = vmov 0.0   ;;  %v80_v11 = vlaneseq }
  0x28   :  { %v47_v1 = vsel %vm46_vm0, %v2475_v0, 0.0  ;;  %v2482_v2 = vld [vmem:[%s2914_s2] ss:$0 sm:$0xff]  ;;  %v2232_v8 = vld [vmem:[#allocation5] ss:$28 sps:$4 sm:$0xff]   ;;  %2045 = vmatprep.subr.bf16.mxu0 %v2411_v9  ;;  %2053 = vmatprep.subr.bf16.mxu1 %v2411_v9  ;;  %vm2412_vm1 = vmmov 0  }
  0x29   :  { %48 = vadd.xlane.f32.xlu0 %v47_v1  ;;  %69 = vrot.lane.b32.xlu1 %v2482_v2, %s2410_s14  ;;  %v2233_v10 = vld [vmem:[#allocation5 + $0x38] ss:$28 sps:$4 sm:$0xff]   ;;  %v2496_v12 = vshrl.u32 %v80_v11, 7  ;;  %v78_v13 = vld [vmem:[%s2914_s2 + $0x1] sm:$0x3]  ;;  %s2413_s16 = smov 64  }
  0x2a   :  { %2046 = vmatpush3.bf16.msra.mxu0 %v2232_v8  ;;  %2049 = vmatprep.mubr.msk.bf16.mxu0 %vm2412_vm1, %v2411_v9  ;;  %vm104_vm2 = vcmask 523264   ;;  %v153_v38 = vand.u32 127, %v80_v11  ;;  %vm206_vm4 = vcmask 64512   ;;  %vm224_vm5 = vcmask 1043456   ;;  %v45_v56 = vld [vmem:[#allocation2 + $0x8] sm:$0xff]  ;;  %s2414_s17 = smov 32  }
  0x2b   :  { %2047 = vmatprep.subr.bf16.mxu0 %v2411_v9  ;;  %2055 = vmatprep.mubr.msk.bf16.mxu1 %vm2412_vm1, %v2411_v9  ;;  %v82_v14 = vsub.s32 0, %v2496_v12  ;;  %v86_v15 = vsub.s32 1, %v2496_v12  ;;  %s2415_s20 = smov 88   ;;  %s2416_s21 = smov 80   ;;  %vm846_vm6 = vcmask 130048   ;;  %vm848_vm7 = vcmask 195584  }
  0x2c   :  { %vm154_vm3 = vcmp.le.s32.totalorder %v153_v38, %v2496_v12  ;;  %s2417_s24 = smov 120   ;;  %s2418_s25 = smov 72   ;;  %vm1508_vm8 = vcmask 785408  }
  0x2d   :  { %v83_v16 = vrot.slane %v78_v13, %v82_v14  ;;  %v87_v17 = vrot.slane %v78_v13, %v86_v15  ;;  %s2419_s26 = smov 112   ;;  %s2420_s27 = smov 104  }
  0x2e   :  { %2048 = vmatpush3.bf16.msra.mxu0 %v2233_v10  ;;  %s2421_s28 = smov 56   ;;  %s2422_s29 = smov 48  }
  0x2f   :  { %2059 = vmatprep.subr.bf16.mxu0 %v2411_v9  ;;  %100 = vrot.lane.b32.xlu1 %v83_v16, %s2413_s16  ;;  %s2423_s30 = smov 40   ;;  %s2424_s4 = smov 16  }
  0x30   :  { %s2425_s5 = smov 24  }
  0x9b   :  { %v70_v23 = vpop.permute.xlu1 %69 }
  0xa1   :  { %v101_v27 = vpop.permute.xlu1 %100 }
  0xb6   :  { %v49_v3 = vpop.xlane.xlu0 %48 }
  0xb7   :  { %v51_v4 = vmul.f32 0.03125, %v49_v3  ;;  %v2234_v3 = vld [vmem:[#allocation5] ss:$28 sps:$4 sm:$0xff]  }
  0xb9   :  { %v52_v5 = vsub.f32 %v2475_v0, %v51_v4  ;;  %v2236_v4 = vld [vmem:[#allocation5 + $0x4] ss:$28 sps:$4 sm:$0xff]  }
  0xbb   :  { %v53_v6 = vmul.f32 %v52_v5, %v52_v5 }
  0xbd   :  { %v54_v7 = vsel %vm46_vm0, %v53_v6, 0.0 }
  0xbe   :  { %55 = vadd.xlane.f32.xlu0 %v54_v7 }
  0xd4   :  { %102 = vrot.lane.b32.xlu0 %v87_v17, %s2413_s16 }
 0x14b   :  { %v56_v18 = vpop.xlane.xlu0 %55 }
 0x14c   :  { %v57_v19 = vmul.f32 0.03125, %v56_v18 }
 0x14e   :  { %v58_v20 = vadd.f32 1e-05, %v57_v19 }
 0x14f   :  { %v103_v28 = vpop.permute.xlu0 %102 }
 0x150   :  { %2262 = vrsqrt.f32 %v58_v20  ;;  %v105_v29 = vsel %vm104_vm2, %v101_v27, %v103_v28 }
 0x15a   :  { %v2263_v21 = vpop.eup %2262 }
 0x15b   :  { %v60_v22 = vmul.f32 %v2263_v21, %v52_v5  ;;  %v2237_v21 = vld [vmem:[#allocation5 + $0x38] ss:$28 sps:$4 sm:$0xff]  }
 0x15d   :  { %v68_v24 = vmul.f32 %v2482_v2, %v60_v22  ;;  %v2239_v22 = vld [vmem:[#allocation5 + $0x3c] ss:$28 sps:$4 sm:$0xff]  }
 0x15f   :  { %v72_v25 = vadd.f32 %v70_v23, %v68_v24  ;;  %v1949_v23 = vld [vmem:[%s2914_s2 + $0x2] ss:$0 sm:$0xff] }
 0x161   :  { %v73_v26 = vpack.c.bf16 %v72_v25, %v72_v25 }
 0x163   :  { %2050 = vmatmul.mubr.msk.bf16.vlgmr.msra.gmra.mrb[0].mxu0 %vm46_vm0, %v73_v26 }
 0x164   :  { %2061 = vmatprep.mubr.msk.bf16.mxu0 %vm2412_vm1, %v2411_v9 }
 0x236   :  { %v144_v30 = vpop.f32.mrb[0].mxu0 }
 0x237   :  { %v145_v31 = vadd.f32 %v144_v30, %v105_v29  ;;  %v2051_v32 = vpop.f32.mrb[1].mxu0 }
 0x238   :  { %v147_v33 = vpop.f32.mrb[2].mxu0 }
 0x239   :  { %v155_v34 = vpack.c.bf16 %v145_v31, %v145_v31  ;;  %v2052_v35 = vpop.f32.mrb[3].mxu0 }
 0x23b   :  { %157 = vrot.lane.b32.xlu1 %v155_v34, %s2410_s14 }
 0x2ad   :  { %v158_v36 = vpop.permute.xlu1 %157 }
 0x2ae   :  { %v163_v37 = vsel %vm46_vm0, %v158_v36, 0 }
 0x2af   :  { %2054 = vmatpush3.bf16.xpose.msra.mxu1 %v163_v37 }
 0x2b0   :  { %2065 = vmatprep.subr.bf16.mxu1 %v2411_v9 }
 0x2b6   :  { %2056 = vmatmul.mubr.msk.bf16.vlgmr.msra.gmra.mrb[0].mxu1 %vm46_vm0, %v155_v34 }
 0x2b7   :  { %2069 = vmatprep.mubr.msk.bf16.mxu1 %vm2412_vm1, %v2411_v9 }
 0x389   :  { %v199_v39 = vpop.f32.mrb[0].mxu1 }
 0x38a   :  { %v205_v40 = vsel %vm154_vm3, %v199_v39, -1e+30  ;;  %v2057_v41 = vpop.f32.mrb[1].mxu1 }
 0x38b   :  { %v202_v42 = vpop.f32.mrb[2].mxu1  ;;  %v207_v43 = vsel %vm206_vm4, %v205_v40, -inf }
 0x38c   :  { %208 = vmax.xlane.f32.xlu1 %v207_v43  ;;  %v2058_v44 = vpop.f32.mrb[3].mxu1 }
 0x39d   :  { %219 = vrot.lane.b32.xlu1 %v155_v34, %s2413_s16 }
 0x419   :  { %v209_v45 = vpop.xlane.xlu1 %208 }
 0x41a   :  { %v210_v46 = vsub.f32 %v205_v40, %v209_v45 }
 0x41c   :  { %v211_v47 = vmul.f32 1.442695, %v210_v46 }
 0x41d   :  { %v220_v48 = vpop.permute.xlu1 %219 }
 0x41e   :  { %2264 = vpow2.f32 %v211_v47  ;;  %v226_v49 = vsel %vm224_vm5, %v220_v48, 0 }
 0x41f   :  { %2060 = vmatpush3.bf16.msra.mxu0 %v226_v49 }
 0x420   :  { %2073 = vmatprep.subr.bf16.mxu0 %v2411_v9 }
 0x428   :  { %v2265_v50 = vpop.eup %2264 }
 0x429   :  { %v213_v51 = vsel %vm206_vm4, %v2265_v50, 0.0 }
 0x42a   :  { %214 = vadd.xlane.f32.xlu0 %v213_v51 }
 0x4b7   :  { %v215_v52 = vpop.xlane.xlu0 %214 }
 0x4b8   :  { %2266 = vrcp.f32 %v215_v52 }
 0x4c2   :  { %v2267_v53 = vpop.eup %2266 }
 0x4c3   :  { %v217_v54 = vmul.f32 %v2267_v53, %v2265_v50 }
 0x4c5   :  { %v218_v55 = vpack.c.bf16 %v217_v54, %v217_v54 }
 0x4c7   :  { %2062 = vmatmul.mubr.msk.bf16.vlgmr.msra.gmra.mrb[4].mxu0 %vm206_vm4, %v218_v55 }
 0x4c8   :  { %2075 = vmatprep.mubr.msk.bf16.mxu0 %vm2412_vm1, %v2411_v9 }
 0x59a   :  { %v262_v57 = vpop.f32.mrb[4].mxu0 }
 0x59b   :  { %v2530_v58 = vadd.f32 %v262_v57, %v2475_v0  ;;  %v2063_v59 = vpop.f32.mrb[5].mxu0  ;;  %v2532_v61 = vadd.f32 %v262_v57, %v45_v56 }
 0x59c   :  { %v265_v60 = vpop.f32.mrb[6].mxu0 }
 0x59d   :  { %v2064_v62 = vpop.f32.mrb[7].mxu0  ;;  %v270_v63 = vsel %vm46_vm0, %v2530_v58, 0.0  ;;  %v273_v1 = vsel %vm46_vm0, %v2532_v61, 0.0 }
 0x59e   :  { %271 = vadd.xlane.f32.xlu0 %v270_v63 }
 0x5a2   :  { %274 = vadd.xlane.f32.xlu0 %v273_v1 }
 0x5b8   :  { %333 = vrot.lane.b32.xlu0 %v2234_v3, %s2414_s17 }
 0x5bc   :  { %335 = vrot.lane.b32.xlu0 %v2236_v4, %s2414_s17 }
 0x5c0   :  { %296 = vrot.lane.b32.xlu0 %v2482_v2, %s2413_s16 }
 0x62b   :  { %v272_v0 = vpop.xlane.xlu0 %271 }
 0x62c   :  { %v276_v5 = vmul.f32 0.03125, %v272_v0 }
 0x62e   :  { %v278_v6 = vsub.f32 %v2530_v58, %v276_v5 }
 0x62f   :  { %v275_v7 = vpop.xlane.xlu0 %274 }
 0x630   :  { %v277_v8 = vmul.f32 0.03125, %v275_v7  ;;  %v280_v10 = vmul.f32 %v278_v6, %v278_v6 }
 0x632   :  { %v279_v11 = vsub.f32 %v2532_v61, %v277_v8  ;;  %v282_v13 = vsel %vm46_vm0, %v280_v10, 0.0 }
 0x633   :  { %283 = vadd.xlane.f32.xlu1 %v282_v13  ;;  %v334_v16 = vpop.permute.xlu0 %333 }
 0x634   :  { %v281_v17 = vmul.f32 %v279_v11, %v279_v11 }
 0x636   :  { %v285_v18 = vsel %vm46_vm0, %v281_v17, 0.0 }
 0x637   :  { %286 = vadd.xlane.f32.xlu0 %v285_v18  ;;  %v336_v19 = vpop.permute.xlu0 %335 }
 0x638   :  { %v342_v20 = vsel %vm46_vm0, %v334_v16, %v336_v19 }
 0x639   :  { %2066 = vmatpush3.bf16.msra.mxu1 %v342_v20 }
 0x63a   :  { %2067 = vmatprep.subr.bf16.mxu1 %v2411_v9 }
 0x63b   :  { %v297_v24 = vpop.permute.xlu0 %296 }
 0x644   :  { %301 = vrot.lane.b32.xlu1 %v2482_v2, %s2414_s17 }
 0x64d   :  { %337 = vrot.lane.b32.xlu0 %v2237_v21, %s2414_s17 }
 0x651   :  { %339 = vrot.lane.b32.xlu0 %v2239_v22, %s2414_s17 }
 0x655   :  { %346 = vrot.lane.b32.xlu0 %v1949_v23, %s2410_s14 }
 0x6c0   :  { %v284_v25 = vpop.xlane.xlu1 %283 }
 0x6c1   :  { %v288_v26 = vmul.f32 0.03125, %v284_v25 }
 0x6c3   :  { %v290_v27 = vadd.f32 1e-05, %v288_v26 }
 0x6c4   :  { %v287_v28 = vpop.xlane.xlu0 %286  ;;  %v302_v38 = vpop.permute.xlu1 %301 }
 0x6c5   :  { %2268 = vrsqrt.f32 %v290_v27  ;;  %v289_v29 = vmul.f32 0.03125, %v287_v28 }
 0x6c7   :  { %v291_v2 = vadd.f32 1e-05, %v289_v29 }
 0x6c8   :  { %v338_v30 = vpop.permute.xlu0 %337 }
 0x6c9   :  { %2270 = vrsqrt.f32 %v291_v2 }
 0x6cc   :  { %v340_v31 = vpop.permute.xlu0 %339 }
 0x6cd   :  { %v343_v32 = vsel %vm46_vm0, %v338_v30, %v340_v31 }
 0x6ce   :  { %2068 = vmatpush3.bf16.msra.mxu1 %v343_v32 }
 0x6cf   :  { %v2269_v33 = vpop.eup %2268  ;;  %2079 = vmatprep.subr.bf16.mxu1 %v2411_v9 }
 0x6d0   :  { %v294_v34 = vmul.f32 %v2269_v33, %v278_v6  ;;  %v347_v43 = vpop.permute.xlu0 %346 }
 0x6d2   :  { %v299_v37 = vmul.f32 %v297_v24, %v294_v34 }
 0x6d3   :  { %v2271_v35 = vpop.eup %2270 }
 0x6d4   :  { %v295_v36 = vmul.f32 %v2271_v35, %v279_v11  ;;  %v304_v40 = vadd.f32 %v302_v38, %v299_v37 }
 0x6d6   :  { %v300_v39 = vmul.f32 %v297_v24, %v295_v36 }
 0x6d8   :  { %v305_v41 = vadd.f32 %v302_v38, %v300_v39 }
 0x6da   :  { %v306_v42 = vpack.c.bf16 %v305_v41, %v304_v40 }
 0x6dc   :  { %2070 = vmatmul.mubr.msk.bf16.vlgmr.msra.gmra.mrb[4].mxu1 %vm46_vm0, %v306_v42 }
 0x6dd   :  { %2081 = vmatprep.mubr.msk.bf16.mxu1 %vm2412_vm1, %v2411_v9 }
 0x7af   :  { %v386_v44 = vpop.f32.mrb[4].mxu1 }
 0x7b0   :  { %v387_v45 = vadd.f32 %v386_v44, %v347_v43  ;;  %v2071_v46 = vpop.f32.mrb[5].mxu1 }
 0x7b1   :  { %v389_v47 = vpop.f32.mrb[6].mxu1 }
 0x7b2   :  { %v2561_v48 = vpack.c.bf16 %v387_v45, %v387_v45  ;;  %v2072_v49 = vpop.f32.mrb[7].mxu1  ;;  %v390_v50 = vadd.f32 %v389_v47, %v347_v43 }
 0x7b4   :  { %505 = vrot.lane.b32.xlu1 %v2561_v48, %s2415_s20  ;;  %395 = vrot.lane.b32.xlu0 %v2561_v48, %s2410_s14  ;;  %v2570_v51 = vpack.c.bf16 %v390_v50, %v390_v50 }
 0x7b8   :  { %615 = vrot.lane.b32.xlu1 %v2561_v48, %s2416_s21  ;;  %503 = vrot.lane.b32.xlu0 %v2561_v48, %s2417_s24 }
 0x7bc   :  { %725 = vrot.lane.b32.xlu1 %v2561_v48, %s2418_s25  ;;  %613 = vrot.lane.b32.xlu0 %v2561_v48, %s2419_s26 }
 0x7c0   :  { %723 = vrot.lane.b32.xlu0 %v2561_v48, %s2420_s27  ;;  %852 = vrot.lane.b32.xlu1 %v2570_v51, %s2410_s14 }
 0x7c4   :  { %962 = vrot.lane.b32.xlu0 %v2570_v51, %s2415_s20  ;;  %960 = vrot.lane.b32.xlu1 %v2570_v51, %s2417_s24 }
 0x7c8   :  { %1072 = vrot.lane.b32.xlu0 %v2570_v51, %s2416_s21  ;;  %1070 = vrot.lane.b32.xlu1 %v2570_v51, %s2419_s26 }
 0x7cc   :  { %1182 = vrot.lane.b32.xlu0 %v2570_v51, %s2418_s25  ;;  %1180 = vrot.lane.b32.xlu1 %v2570_v51, %s2420_s27 }
 0x7d0   :  { %565 = vrot.lane.b32.xlu1 %v2561_v48, %s2421_s28 }
 0x826   :  { %v396_v52 = vpop.permute.xlu0 %395  ;;  %v506_v54 = vpop.permute.xlu1 %505 }
 0x827   :  { %v401_v53 = vsel %vm206_vm4, %v396_v52, 0  ;;  %v511_v55 = vsel %vm206_vm4, %v506_v54, 0 }
 0x828   :  { %2074 = vmatpush3.bf16.xpose.msra.mxu0 %v401_v53 }
 0x829   :  { %2085 = vmatprep.subr.bf16.mxu0 %v2411_v9 }
 0x82a   :  { %v616_v56 = vpop.permute.xlu1 %615  ;;  %v504_v57 = vpop.permute.xlu0 %503 }
 0x82b   :  { %v621_v59 = vsel %vm206_vm4, %v616_v56, 0 }
 0x82e   :  { %v726_v60 = vpop.permute.xlu1 %725  ;;  %v614_v62 = vpop.permute.xlu0 %613 }
 0x82f   :  { %2076 = vmatmul.mubr.msk.bf16.vlgmr.msra.gmra.mrb[8].mxu0 %vm206_vm4, %v2561_v48  ;;  %v731_v63 = vsel %vm206_vm4, %v726_v60, 0 }
 0x830   :  { %2086 = vmatpush3.bf16.xpose.msra.mxu0 %v511_v55  ;;  %2087 = vmatprep.mubr.msk.bf16.mxu0 %vm2412_vm1, %v2411_v9 }
 0x831   :  { %2097 = vmatprep.subr.bf16.mxu0 %v2411_v9 }
 0x832   :  { %v853_v1 = vpop.permute.xlu1 %852  ;;  %v724_v3 = vpop.permute.xlu0 %723 }
 0x833   :  { %v858_v4 = vsel %vm206_vm4, %v853_v1, 0 }
 0x836   :  { %v963_v0 = vpop.permute.xlu0 %962  ;;  %v961_v7 = vpop.permute.xlu1 %960 }
 0x837   :  { %2088 = vmatmul.mubr.msk.bf16.vlgmr.msra.gmra.mrb[12].mxu0 %vm206_vm4, %v504_v57  ;;  %v968_v5 = vsel %vm206_vm4, %v963_v0, 0 }
 0x838   :  { %2098 = vmatpush3.bf16.xpose.msra.mxu0 %v621_v59  ;;  %2099 = vmatprep.mubr.msk.bf16.mxu0 %vm2412_vm1, %v2411_v9 }
 0x839   :  { %2109 = vmatprep.subr.bf16.mxu0 %v2411_v9 }
 0x83a   :  { %v1073_v6 = vpop.permute.xlu0 %1072  ;;  %v1071_v11 = vpop.permute.xlu1 %1070 }
 0x83b   :  { %v1078_v8 = vsel %vm206_vm4, %v1073_v6, 0 }
 0x83e   :  { %v1183_v10 = vpop.permute.xlu0 %1182  ;;  %v1181_v16 = vpop.permute.xlu1 %1180 }
 0x83f   :  { %2100 = vmatmul.mubr.msk.bf16.vlgmr.msra.gmra.mrb[16].mxu0 %vm206_vm4, %v614_v62  ;;  %v1188_v13 = vsel %vm206_vm4, %v1183_v10, 0 }
 0x840   :  { %2110 = vmatpush3.bf16.xpose.msra.mxu0 %v731_v63  ;;  %2111 = vmatprep.mubr.msk.bf16.mxu0 %vm2412_vm1, %v2411_v9 }
 0x841   :  { %2121 = vmatprep.subr.bf16.mxu0 %v2411_v9 }
 0x842   :  { %v2643_v63 = vpop.permute.xlu1 %565 }
 0x847   :  { %2112 = vmatmul.mubr.msk.bf16.vlgmr.msra.gmra.mrb[20].mxu0 %vm206_vm4, %v724_v3 }
 0x848   :  { %2122 = vmatpush3.bf16.xpose.msra.mxu0 %v858_v4  ;;  %2123 = vmatprep.mubr.msk.bf16.mxu0 %vm2412_vm1, %v2411_v9 }
 0x849   :  { %2133 = vmatprep.subr.bf16.mxu0 %v2411_v9 }
 0x84f   :  { %2124 = vmatmul.mubr.msk.bf16.vlgmr.msra.gmra.mrb[24].mxu0 %vm206_vm4, %v2570_v51 }
 0x850   :  { %2134 = vmatpush3.bf16.xpose.msra.mxu0 %v968_v5  ;;  %2135 = vmatprep.mubr.msk.bf16.mxu0 %vm2412_vm1, %v2411_v9 }
 0x851   :  { %2145 = vmatprep.subr.bf16.mxu0 %v2411_v9 }
 0x857   :  { %2136 = vmatmul.mubr.msk.bf16.vlgmr.msra.gmra.mrb[28].mxu0 %vm206_vm4, %v961_v7 }
 0x858   :  { %2146 = vmatpush3.bf16.xpose.msra.mxu0 %v1078_v8  ;;  %2147 = vmatprep.mubr.msk.bf16.mxu0 %vm2412_vm1, %v2411_v9 }
 0x859   :  { %2157 = vmatprep.subr.bf16.mxu0 %v2411_v9 }
 0x85f   :  { %2148 = vmatmul.mubr.msk.bf16.vlgmr.msra.gmra.mrb[32].mxu0 %vm206_vm4, %v1071_v11 }
 0x860   :  { %2158 = vmatpush3.bf16.xpose.msra.mxu0 %v1188_v13  ;;  %2159 = vmatprep.mubr.msk.bf16.mxu0 %vm2412_vm1, %v2411_v9 }
 0x861   :  { %2169 = vmatprep.subr.bf16.mxu0 %v2411_v9 }
 0x867   :  { %2160 = vmatmul.mubr.msk.bf16.vlgmr.msra.gmra.mrb[36].mxu0 %vm206_vm4, %v1181_v16 }
 0x868   :  { %2173 = vmatprep.mubr.msk.bf16.mxu0 %vm2412_vm1, %v2411_v9 }
 0x902   :  { %v437_v17 = vpop.f32.mrb[8].mxu0 }
 0x903   :  { %v2077_v18 = vpop.f32.mrb[9].mxu0  ;;  %v443_v19 = vsel %vm206_vm4, %v437_v17, -inf }
 0x904   :  { %v440_v20 = vpop.f32.mrb[10].mxu0  ;;  %444 = vmax.xlane.f32.xlu0 %v443_v19 }
 0x905   :  { %v2078_v21 = vpop.f32.mrb[11].mxu0 }
 0x90a   :  { %v547_v22 = vpop.f32.mrb[12].mxu0 }
 0x90b   :  { %v2089_v23 = vpop.f32.mrb[13].mxu0  ;;  %v553_v24 = vsel %vm206_vm4, %v547_v22, -inf }
 0x90c   :  { %v550_v25 = vpop.f32.mrb[14].mxu0  ;;  %554 = vmax.xlane.f32.xlu1 %v553_v24 }
 0x90d   :  { %v2090_v26 = vpop.f32.mrb[15].mxu0 }
 0x912   :  { %v657_v27 = vpop.f32.mrb[16].mxu0 }
 0x913   :  { %v2101_v28 = vpop.f32.mrb[17].mxu0  ;;  %v663_v47 = vsel %vm206_vm4, %v657_v27, -inf }
 0x914   :  { %v660_v29 = vpop.f32.mrb[18].mxu0 }
 0x915   :  { %v2102_v2 = vpop.f32.mrb[19].mxu0 }
 0x91a   :  { %v767_v30 = vpop.f32.mrb[20].mxu0  ;;  %455 = vrot.lane.b32.xlu0 %v2561_v48, %s2413_s16 }
 0x91b   :  { %v2113_v31 = vpop.f32.mrb[21].mxu0  ;;  %v773_v54 = vsel %vm206_vm4, %v767_v30, -inf }
 0x91c   :  { %v770_v32 = vpop.f32.mrb[22].mxu0 }
 0x91d   :  { %v2114_v33 = vpop.f32.mrb[23].mxu0 }
 0x922   :  { %v894_v34 = vpop.f32.mrb[24].mxu0 }
 0x923   :  { %v2125_v35 = vpop.f32.mrb[25].mxu0  ;;  %v900_v56 = vsel %vm206_vm4, %v894_v34, -inf }
 0x924   :  { %v897_v36 = vpop.f32.mrb[26].mxu0 }
 0x925   :  { %v2126_v37 = vpop.f32.mrb[27].mxu0 }
 0x92a   :  { %v1004_v38 = vpop.f32.mrb[28].mxu0 }
 0x92b   :  { %v2137_v39 = vpop.f32.mrb[29].mxu0  ;;  %v1010_v40 = vsel %vm206_vm4, %v1004_v38, -inf }
 0x92c   :  { %1011 = vmax.xlane.f32.xlu1 %v1010_v40  ;;  %v1007_v41 = vpop.f32.mrb[30].mxu0 }
 0x92d   :  { %v2138_v42 = vpop.f32.mrb[31].mxu0 }
 0x932   :  { %v2630_v43 = vpop.f32.mrb[32].mxu0 }
 0x933   :  { %v2149_v44 = vpop.f32.mrb[33].mxu0  ;;  %v1120_v57 = vsel %vm206_vm4, %v2630_v43, -inf }
 0x934   :  { %v1117_v45 = vpop.f32.mrb[34].mxu0 }
 0x935   :  { %v2150_v46 = vpop.f32.mrb[35].mxu0 }
 0x939   :  { %664 = vmax.xlane.f32.xlu0 %v663_v47 }
 0x93a   :  { %v2633_v49 = vpop.f32.mrb[36].mxu0 }
 0x93b   :  { %v2161_v50 = vpop.f32.mrb[37].mxu0  ;;  %v1230_v52 = vsel %vm206_vm4, %v2633_v49, -inf }
 0x93c   :  { %1231 = vmax.xlane.f32.xlu1 %v1230_v52  ;;  %v1227_v53 = vpop.f32.mrb[38].mxu0 }
 0x93d   :  { %774 = vmax.xlane.f32.xlu0 %v773_v54  ;;  %v2162_v55 = vpop.f32.mrb[39].mxu0 }
 0x941   :  { %901 = vmax.xlane.f32.xlu0 %v900_v56 }
 0x945   :  { %1121 = vmax.xlane.f32.xlu0 %v1120_v57 }
 0x95b   :  { %675 = vrot.lane.b32.xlu0 %v2561_v48, %s2422_s29 }
 0x991   :  { %v445_v59 = vpop.xlane.xlu0 %444 }
 0x992   :  { %v446_v60 = vsub.f32 %v437_v17, %v445_v59 }
 0x994   :  { %v447_v62 = vmul.f32 1.442695, %v446_v60 }
 0x995   :  { %v456_v1 = vpop.permute.xlu0 %455 }
 0x996   :  { %2272 = vpow2.f32 %v447_v62  ;;  %v461_v3 = vsel %vm224_vm5, %v456_v1, 0 }
 0x997   :  { %2080 = vmatpush3.bf16.msra.mxu1 %v461_v3 }
 0x998   :  { %2091 = vmatprep.subr.bf16.mxu1 %v2411_v9 }
 0x999   :  { %v555_v4 = vpop.xlane.xlu1 %554 }
 0x99a   :  { %v556_v0 = vsub.f32 %v547_v22, %v555_v4 }
 0x99c   :  { %v557_v5 = vmul.f32 1.442695, %v556_v0 }
 0x99e   :  { %2274 = vpow2.f32 %v557_v5 }
 0x9a0   :  { %v2273_v6 = vpop.eup %2272 }
 0x9a1   :  { %v449_v7 = vsel %vm206_vm4, %v2273_v6, 0.0 }
 0x9a2   :  { %450 = vadd.xlane.f32.xlu0 %v449_v7 }
 0x9a8   :  { %v2648_v8 = vpop.eup %2274 }
 0x9a9   :  { %v559_v10 = vsel %vm206_vm4, %v2648_v8, 0.0 }
 0x9aa   :  { %560 = vadd.xlane.f32.xlu1 %v559_v10 }
 0x9b9   :  { %v1012_v20 = vpop.xlane.xlu1 %1011 }
 0x9ba   :  { %v1013_v23 = vsub.f32 %v1004_v38, %v1012_v20 }
 0x9bb   :  { %912 = vrot.lane.b32.xlu1 %v2570_v51, %s2413_s16 }
 0x9bc   :  { %v1014_v26 = vmul.f32 1.442695, %v1013_v23 }
 0x9c6   :  { %v665_v11 = vpop.xlane.xlu0 %664 }
 0x9c7   :  { %v666_v13 = vsub.f32 %v657_v27, %v665_v11 }
 0x9c9   :  { %v667_v16 = vmul.f32 1.442695, %v666_v13  ;;  %v1232_v36 = vpop.xlane.xlu1 %1231 }
 0x9ca   :  { %v775_v17 = vpop.xlane.xlu0 %774  ;;  %v1233_v37 = vsub.f32 %v2633_v49, %v1232_v36  ;;  %v571_v49 = vsel %vm224_vm5, %v2643_v63, 0 }
 0x9cb   :  { %2276 = vpow2.f32 %v667_v16  ;;  %v776_v18 = vsub.f32 %v767_v30, %v775_v17 }
 0x9cc   :  { %v1234_v39 = vmul.f32 1.442695, %v1233_v37 }
 0x9cd   :  { %v777_v19 = vmul.f32 1.442695, %v776_v18 }
 0x9ce   :  { %v902_v21 = vpop.xlane.xlu0 %901 }
 0x9cf   :  { %v903_v22 = vsub.f32 %v894_v34, %v902_v21  ;;  %2278 = vpow2.f32 %v777_v19 }
 0x9d1   :  { %v904_v24 = vmul.f32 1.442695, %v903_v22 }
 0x9d2   :  { %v1122_v33 = vpop.xlane.xlu0 %1121 }
 0x9d3   :  { %2280 = vpow2.f32 %v904_v24  ;;  %v1123_v34 = vsub.f32 %v2630_v43, %v1122_v33 }
 0x9d4   :  { %2282 = vpow2.f32 %v1014_v26 }
 0x9d5   :  { %v2277_v25 = vpop.eup %2276  ;;  %v1124_v35 = vmul.f32 1.442695, %v1123_v34 }
 0x9d6   :  { %v669_v28 = vsel %vm206_vm4, %v2277_v25, 0.0  ;;  %v676_v42 = vpop.permute.xlu0 %675 }
 0x9d7   :  { %670 = vadd.xlane.f32.xlu0 %v669_v28  ;;  %2284 = vpow2.f32 %v1124_v35  ;;  %v681_v53 = vsel %vm224_vm5, %v676_v42, 0 }
 0x9d8   :  { %2286 = vpow2.f32 %v1234_v39 }
 0x9d9   :  { %v2655_v29 = vpop.eup %2278 }
 0x9da   :  { %v779_v27 = vsel %vm206_vm4, %v2655_v29, 0.0 }
 0x9dd   :  { %v2659_v2 = vpop.eup %2280 }
 0x9de   :  { %v906_v30 = vsel %vm206_vm4, %v2659_v2, 0.0  ;;  %v2663_v31 = vpop.eup %2282 }
 0x9df   :  { %780 = vadd.xlane.f32.xlu1 %v779_v27  ;;  %v1016_v32 = vsel %vm206_vm4, %v2663_v31, 0.0 }
 0x9e1   :  { %v2672_v38 = vpop.eup %2284 }
 0x9e2   :  { %v1126_v40 = vsel %vm206_vm4, %v2672_v38, 0.0 }
 0x9e3   :  { %907 = vadd.xlane.f32.xlu1 %v906_v30  ;;  %v2240_v30 = vld [vmem:[#allocation5 + $0x4] ss:$28 sps:$4 sm:$0xff]  }
 0x9e7   :  { %1017 = vadd.xlane.f32.xlu1 %v1016_v32 }
 0x9ed   :  { %785 = vrot.lane.b32.xlu0 %v2561_v48, %s2423_s30  ;;  %v2676_v48 = vpop.eup %2286 }
 0x9ee   :  { %v1236_v41 = vsel %vm206_vm4, %v2676_v48, 0.0 }
 0x9f8   :  { %1022 = vrot.lane.b32.xlu1 %v2570_v51, %s2421_s28 }
 0xa0c   :  { %1127 = vadd.xlane.f32.xlu0 %v1126_v40 }
 0xa1c   :  { %1237 = vadd.xlane.f32.xlu1 %v1236_v41 }
 0xa22   :  { %1132 = vrot.lane.b32.xlu0 %v2570_v51, %s2422_s29 }
 0xa26   :  { %1327 = vrot.lane.b32.xlu0 %v2240_v30, %s2413_s16 }
 0xa2d   :  { %1242 = vrot.lane.b32.xlu1 %v2570_v51, %s2423_s30 }
 0xa2f   :  { %v451_v43 = vpop.xlane.xlu0 %450 }
 0xa30   :  { %2288 = vrcp.f32 %v451_v43 }
 0xa37   :  { %v561_v44 = vpop.xlane.xlu1 %560 }
 0xa38   :  { %2290 = vrcp.f32 %v561_v44 }
 0xa3a   :  { %v2289_v45 = vpop.eup %2288 }
 0xa3b   :  { %v453_v46 = vmul.f32 %v2289_v45, %v2273_v6  ;;  %v913_v55 = vpop.permute.xlu1 %912 }
 0xa3c   :  { %v918_v7 = vsel %vm224_vm5, %v913_v55, 0 }
 0xa3d   :  { %v454_v47 = vpack.c.bf16 %v453_v46, %v453_v46 }
 0xa3f   :  { %2082 = vmatmul.mubr.msk.bf16.vlgmr.msra.gmra.mrb[8].mxu1 %vm206_vm4, %v454_v47 }
 0xa40   :  { %2092 = vmatpush3.bf16.msra.mxu1 %v571_v49  ;;  %2093 = vmatprep.mubr.msk.bf16.mxu1 %vm2412_vm1, %v2411_v9 }
 0xa41   :  { %2103 = vmatprep.subr.bf16.mxu1 %v2411_v9 }
 0xa42   :  { %v2291_v50 = vpop.eup %2290 }
 0xa43   :  { %v563_v51 = vmul.f32 %v2291_v50, %v2648_v8 }
 0xa45   :  { %v564_v52 = vpack.c.bf16 %v563_v51, %v563_v51 }
 0xa47   :  { %2094 = vmatmul.mubr.msk.bf16.vlgmr.msra.gmra.mrb[12].mxu1 %vm206_vm4, %v564_v52 }
 0xa48   :  { %2104 = vmatpush3.bf16.msra.mxu1 %v681_v53  ;;  %2105 = vmatprep.mubr.msk.bf16.mxu1 %vm2412_vm1, %v2411_v9 }
 0xa49   :  { %2115 = vmatprep.subr.bf16.mxu1 %v2411_v9 }
 0xa64   :  { %v671_v54 = vpop.xlane.xlu0 %670 }
 0xa65   :  { %2292 = vrcp.f32 %v671_v54 }
 0xa68   :  { %v786_v62 = vpop.permute.xlu0 %785 }
 0xa69   :  { %v791_v1 = vsel %vm224_vm5, %v786_v62, 0 }
 0xa6c   :  { %v781_v56 = vpop.xlane.xlu1 %780 }
 0xa6d   :  { %2294 = vrcp.f32 %v781_v56 }
 0xa6f   :  { %v2293_v57 = vpop.eup %2292 }
 0xa70   :  { %v673_v59 = vmul.f32 %v2293_v57, %v2277_v25  ;;  %v908_v60 = vpop.xlane.xlu1 %907 }
 0xa71   :  { %2296 = vrcp.f32 %v908_v60 }
 0xa72   :  { %v674_v63 = vpack.c.bf16 %v673_v59, %v673_v59 }
 0xa74   :  { %2106 = vmatmul.mubr.msk.bf16.vlgmr.msra.gmra.mrb[16].mxu1 %vm206_vm4, %v674_v63  ;;  %v1018_v3 = vpop.xlane.xlu1 %1017 }
 0xa75   :  { %2116 = vmatpush3.bf16.msra.mxu1 %v791_v1  ;;  %2117 = vmatprep.mubr.msk.bf16.mxu1 %vm2412_vm1, %v2411_v9  ;;  %2298 = vrcp.f32 %v1018_v3  ;;  %v2241_v1 = vld [vmem:[#allocation5 + $0x3c] ss:$28 sps:$4 sm:$0xff]  }
 0xa76   :  { %2127 = vmatprep.subr.bf16.mxu1 %v2411_v9 }
 0xa77   :  { %v2295_v4 = vpop.eup %2294 }
 0xa78   :  { %v783_v0 = vmul.f32 %v2295_v4, %v2655_v29  ;;  %v1023_v10 = vpop.permute.xlu1 %1022 }
 0xa79   :  { %v1028_v16 = vsel %vm224_vm5, %v1023_v10, 0 }
 0xa7a   :  { %v784_v5 = vpack.c.bf16 %v783_v0, %v783_v0 }
 0xa7b   :  { %v2297_v6 = vpop.eup %2296 }
 0xa7c   :  { %2118 = vmatmul.mubr.msk.bf16.vlgmr.msra.gmra.mrb[20].mxu1 %vm206_vm4, %v784_v5  ;;  %v910_v8 = vmul.f32 %v2297_v6, %v2659_v2 }
 0xa7d   :  { %2128 = vmatpush3.bf16.msra.mxu1 %v918_v7  ;;  %2129 = vmatprep.mubr.msk.bf16.mxu1 %vm2412_vm1, %v2411_v9 }
 0xa7e   :  { %2139 = vmatprep.subr.bf16.mxu1 %v2411_v9  ;;  %v911_v11 = vpack.c.bf16 %v910_v8, %v910_v8 }
 0xa7f   :  { %v2299_v13 = vpop.eup %2298 }
 0xa80   :  { %v1020_v17 = vmul.f32 %v2299_v13, %v2663_v31 }
 0xa82   :  { %v1021_v18 = vpack.c.bf16 %v1020_v17, %v1020_v17 }
 0xa84   :  { %2130 = vmatmul.mubr.msk.bf16.vlgmr.msra.gmra.mrb[24].mxu1 %vm206_vm4, %v911_v11 }
 0xa85   :  { %2140 = vmatpush3.bf16.msra.mxu1 %v1028_v16  ;;  %2141 = vmatprep.mubr.msk.bf16.mxu1 %vm2412_vm1, %v2411_v9 }
 0xa86   :  { %2151 = vmatprep.subr.bf16.mxu1 %v2411_v9 }
 0xa8c   :  { %2142 = vmatmul.mubr.msk.bf16.vlgmr.msra.gmra.mrb[28].mxu1 %vm206_vm4, %v1021_v18 }
 0xa8d   :  { %2153 = vmatprep.mubr.msk.bf16.mxu1 %vm2412_vm1, %v2411_v9 }
 0xa99   :  { %v1128_v19 = vpop.xlane.xlu0 %1127 }
 0xa9a   :  { %2300 = vrcp.f32 %v1128_v19 }
 0xa9d   :  { %v1133_v20 = vpop.permute.xlu0 %1132 }
 0xa9e   :  { %v1138_v21 = vsel %vm224_vm5, %v1133_v20, 0 }
 0xa9f   :  { %2152 = vmatpush3.bf16.msra.mxu1 %v1138_v21 }
 0xaa0   :  { %2163 = vmatprep.subr.bf16.mxu1 %v2411_v9 }
 0xaa1   :  { %v1328_v47 = vpop.permute.xlu0 %1327 }
 0xaa2   :  { %2170 = vmatpush3.bf16.msra.mxu0 %v1328_v47 }
 0xaa3   :  { %2171 = vmatprep.subr.bf16.mxu0 %v2411_v9 }
 0xaa4   :  { %v2301_v22 = vpop.eup %2300 }
 0xaa5   :  { %v1130_v23 = vmul.f32 %v2301_v22, %v2672_v38 }
 0xaa7   :  { %v1131_v24 = vpack.c.bf16 %v1130_v23, %v1130_v23 }
 0xaa9   :  { %2154 = vmatmul.mubr.msk.bf16.vlgmr.msra.gmra.mrb[32].mxu1 %vm206_vm4, %v1131_v24  ;;  %v1238_v25 = vpop.xlane.xlu1 %1237 }
 0xaaa   :  { %2302 = vrcp.f32 %v1238_v25  ;;  %2165 = vmatprep.mubr.msk.bf16.mxu1 %vm2412_vm1, %v2411_v9 }
 0xaad   :  { %v1243_v26 = vpop.permute.xlu1 %1242 }
 0xaae   :  { %v1248_v28 = vsel %vm224_vm5, %v1243_v26, 0 }
 0xaaf   :  { %2164 = vmatpush3.bf16.msra.mxu1 %v1248_v28 }
 0xab4   :  { %v2303_v29 = vpop.eup %2302 }
 0xab5   :  { %v1240_v27 = vmul.f32 %v2303_v29, %v2676_v48  ;;  %v1971_v29 = vld [vmem:[%s2914_s2 + $0x3] ss:$0 sm:$0xff] }
 0xab7   :  { %v1241_v2 = vpack.c.bf16 %v1240_v27, %v1240_v27 }
 0xab9   :  { %2166 = vmatmul.mubr.msk.bf16.vlgmr.msra.gmra.mrb[36].mxu1 %vm206_vm4, %v1241_v2 }
 0xb12   :  { %v497_v31 = vpop.f32.mrb[8].mxu1 }
 0xb13   :  { %v2083_v32 = vpop.f32.mrb[9].mxu1 }
 0xb14   :  { %v500_v33 = vpop.f32.mrb[10].mxu1 }
 0xb15   :  { %v2084_v34 = vpop.f32.mrb[11].mxu1 }
 0xb1a   :  { %v607_v35 = vpop.f32.mrb[12].mxu1 }
 0xb1b   :  { %v2095_v36 = vpop.f32.mrb[13].mxu1 }
 0xb1c   :  { %v610_v37 = vpop.f32.mrb[14].mxu1 }
 0xb1d   :  { %v2096_v38 = vpop.f32.mrb[15].mxu1 }
 0xb1e   :  { %v2242_v38 = vld [vmem:[#allocation5 + $0x8] ss:$28 sps:$4 sm:$0xff]  }
 0xb47   :  { %v717_v39 = vpop.f32.mrb[16].mxu1 }
 0xb48   :  { %v2107_v40 = vpop.f32.mrb[17].mxu1 }
 0xb49   :  { %v720_v41 = vpop.f32.mrb[18].mxu1  ;;  %v2249_v40 = vld [vmem:[#allocation5 + $0xc] ss:$28 sps:$4 sm:$0xff]  }
 0xb4a   :  { %v2108_v42 = vpop.f32.mrb[19].mxu1  ;;  %v2251_v41 = vld [vmem:[#allocation5 + $0x10] ss:$28 sps:$4 sm:$0xff]  }
 0xb4b   :  { %v2253_v42 = vld [vmem:[#allocation5 + $0x48] ss:$28 sps:$4 sm:$0xff]  }
 0xb4f   :  { %v827_v43 = vpop.f32.mrb[20].mxu1 }
 0xb50   :  { %v2119_v48 = vpop.f32.mrb[21].mxu1 }
 0xb51   :  { %v830_v44 = vpop.f32.mrb[22].mxu1 }
 0xb52   :  { %v2120_v45 = vpop.f32.mrb[23].mxu1 }
 0xb57   :  { %v954_v46 = vpop.f32.mrb[24].mxu1 }
 0xb58   :  { %v2131_v49 = vpop.f32.mrb[25].mxu1 }
 0xb59   :  { %v957_v50 = vpop.f32.mrb[26].mxu1 }
 0xb5a   :  { %v2132_v51 = vpop.f32.mrb[27].mxu1 }
 0xb5f   :  { %v1064_v52 = vpop.f32.mrb[28].mxu1 }
 0xb60   :  { %v2217_v53 = vpack.i.bf16 %v1064_v52, %v607_v35  ;;  %v2143_v54 = vpop.f32.mrb[29].mxu1 }
 0xb61   :  { %v1067_v55 = vpop.f32.mrb[30].mxu1 }
 0xb62   :  { %2218 = vrot.lane.b32.xlu1 %v2217_v53, %s2406_s23  ;;  %v2144_v56 = vpop.f32.mrb[31].mxu1 }
 0xb7c   :  { %v1174_v57 = vpop.f32.mrb[32].mxu1 }
 0xb7d   :  { %v2222_v59 = vpack.i.bf16 %v1174_v57, %v717_v39  ;;  %v2155_v60 = vpop.f32.mrb[33].mxu1  ;;  %v2244_v39 = vld [vmem:[#allocation5 + $0x4] ss:$28 sps:$4 sm:$0xff]  }
 0xb7e   :  { %v1177_v62 = vpop.f32.mrb[34].mxu1 }
 0xb7f   :  { %2223 = vrot.lane.b32.xlu0 %v2222_v59, %s2424_s4  ;;  %v2156_v63 = vpop.f32.mrb[35].mxu1 }
 0xb83   :  { %1329 = vrot.lane.b32.xlu0 %v2241_v1, %s2413_s16  ;;  %v1975_v1 = vld [vmem:[%s2914_s2 + $0x1] ss:$0 sm:$0xff] }
 0xb8c   :  { %v1284_v3 = vpop.f32.mrb[36].mxu1 }
 0xb8d   :  { %v2227_v4 = vpack.i.bf16 %v1284_v3, %v827_v43  ;;  %v2167_v0 = vpop.f32.mrb[37].mxu1  ;;  %v2252_v3 = vld [vmem:[#allocation5 + $0x3c] ss:$28 sps:$4 sm:$0xff]  }
 0xb8e   :  { %v1287_v5 = vpop.f32.mrb[38].mxu1 }
 0xb8f   :  { %2228 = vrot.lane.b32.xlu1 %v2227_v4, %s2425_s5  ;;  %v2168_v6 = vpop.f32.mrb[39].mxu1 }
 0xb90   :  { %v2426_v6 = vmov 0  }
 0xb91   :  { %1549 = vmatprep.mubr.bf16.mxu1 %v2426_v6 }
 0xbd4   :  { %v2219_v10 = vpop.permute.xlu1 %2218 }
 0xbd5   :  { %v2221_v11 = vunpack.i.h.bf16 %v2219_v10  ;;  %v2220_v13 = vunpack.i.l.bf16 %v2219_v10 }
 0xbd7   :  { %v1302_v19 = vsel %vm206_vm4, %v954_v46, %v2221_v11  ;;  %v845_v20 = vsel %vm206_vm4, %v497_v31, %v2220_v13 }
 0xbf1   :  { %v2224_v7 = vpop.permute.xlu0 %2223 }
 0xbf2   :  { %v2226_v16 = vunpack.i.h.bf16 %v2224_v7  ;;  %v2225_v17 = vunpack.i.l.bf16 %v2224_v7  ;;  %v1428_v7 = vld [vmem:[%s2914_s2 + $0x3] sm:$0x7] }
 0xbf3   :  { %v1437_v10 = vrot.slane %v1428_v7, %v86_v15  ;;  %v1433_v13 = vrot.slane %v1428_v7, %v82_v14  ;;  %v2260_v15 = vld [vmem:[#allocation5 + $0x50] ss:$28 sps:$4 sm:$0xff]  }
 0xbf4   :  { %v1303_v23 = vsel %vm846_vm6, %v1302_v19, %v2226_v16  ;;  %v847_v24 = vsel %vm846_vm6, %v845_v20, %v2225_v17  ;;  %v2254_v16 = vld [vmem:[#allocation5 + $0x14] ss:$28 sps:$4 sm:$0xff]   ;;  %v2258_v19 = vld [vmem:[#allocation5 + $0x4c] ss:$28 sps:$4 sm:$0xff]  }
 0xbf5   :  { %v1330_v8 = vpop.permute.xlu0 %1329  ;;  %v2256_v17 = vld [vmem:[#allocation5 + $0x18] ss:$28 sps:$4 sm:$0xff]   ;;  %v2261_v20 = vld [vmem:[#allocation5 + $0x48] ss:$28 sps:$4 sm:$0xff]  }
 0xbf6   :  { %2172 = vmatpush3.bf16.msra.mxu0 %v1330_v8  ;;  %v1440_v8 = vsub.s32 2, %v2496_v12 }
 0xbf7   :  { %2177 = vmatprep.subr.bf16.mxu0 %v2411_v9 }
 0xbf8   :  { %v1441_v11 = vrot.slane %v1428_v7, %v1440_v8 }
 0xc01   :  { %v2229_v18 = vpop.permute.xlu1 %2228 }
 0xc02   :  { %v2231_v21 = vunpack.i.h.bf16 %v2229_v18  ;;  %v2230_v22 = vunpack.i.l.bf16 %v2229_v18  ;;  %v2257_v18 = vld [vmem:[#allocation5 + $0x10] ss:$28 sps:$4 sm:$0xff]  }
 0xc04   :  { %v1304_v25 = vsel %vm848_vm7, %v1303_v23, %v2231_v21  ;;  %v849_v26 = vsel %vm848_vm7, %v847_v24, %v2230_v22 }
 0xc05   :  { %v1305_v28 = vpack.c.bf16 %v1304_v25, %v849_v26 }
 0xc07   :  { %2174 = vmatmul.mubr.msk.bf16.vlgmr.msra.gmra.mrb[40].mxu0 %vm46_vm0, %v1305_v28 }
 0xc08   :  { %2181 = vmatprep.mubr.msk.bf16.mxu0 %vm2412_vm1, %v2411_v9 }
 0xcda   :  { %v1370_v27 = vpop.f32.mrb[40].mxu0 }
 0xcdb   :  { %v1371_v2 = vadd.f32 %v1971_v29, %v1370_v27  ;;  %v2175_v30 = vpop.f32.mrb[41].mxu0 }
 0xcdc   :  { %v1373_v31 = vpop.f32.mrb[42].mxu0 }
 0xcdd   :  { %v2739_v32 = vadd.f32 %v1371_v2, %v2530_v58  ;;  %v1374_v33 = vadd.f32 %v1971_v29, %v1373_v31  ;;  %v2176_v34 = vpop.f32.mrb[43].mxu0  ;;  %v2245_v58 = vld [vmem:[#allocation5 + $0x40] ss:$28 sps:$4 sm:$0xff]  }
 0xcdf   :  { %v2742_v35 = vadd.f32 %v1374_v33, %v2532_v61  ;;  %v1379_v36 = vsel %vm46_vm0, %v2739_v32, 0.0  ;;  %v2247_v61 = vld [vmem:[#allocation5 + $0x44] ss:$28 sps:$4 sm:$0xff]  }
 0xce0   :  { %1380 = vadd.xlane.f32.xlu1 %v1379_v36 }
 0xce1   :  { %v1382_v37 = vsel %vm46_vm0, %v2742_v35, 0.0 }
 0xce2   :  { %1383 = vadd.xlane.f32.xlu0 %v1382_v37 }
 0xcf1   :  { %1476 = vrot.lane.b32.xlu1 %v2242_v38, %s2414_s17 }
 0xcf5   :  { %1474 = vrot.lane.b32.xlu1 %v2244_v39, %s2414_s17 }
 0xcf8   :  { %1478 = vrot.lane.b32.xlu0 %v2249_v40, %s2414_s17 }
 0xcf9   :  { %1484 = vrot.lane.b32.xlu1 %v2245_v58, %s2414_s17 }
 0xcfd   :  { %1486 = vrot.lane.b32.xlu1 %v2247_v61, %s2414_s17 }
 0xd01   :  { %1480 = vrot.lane.b32.xlu1 %v2251_v41, %s2414_s17 }
 0xd05   :  { %1488 = vrot.lane.b32.xlu1 %v2253_v42, %s2414_s17 }
 0xd09   :  { %1506 = vrot.lane.b32.xlu1 %v1441_v11, %s2410_s14 }
 0xd0d   :  { %1808 = vrot.lane.b32.xlu1 %v2254_v16, %s2410_s14 }
 0xd11   :  { %1806 = vrot.lane.b32.xlu1 %v2257_v18, %s2410_s14 }
 0xd15   :  { %1816 = vrot.lane.b32.xlu1 %v2260_v15, %s2410_s14 }
 0xd6d   :  { %v1381_v43 = vpop.xlane.xlu1 %1380 }
 0xd6e   :  { %v1385_v48 = vmul.f32 0.03125, %v1381_v43 }
 0xd6f   :  { %v1384_v44 = vpop.xlane.xlu0 %1383 }
 0xd70   :  { %v2756_v45 = vsub.f32 %v2739_v32, %v1385_v48  ;;  %v1386_v46 = vmul.f32 0.03125, %v1384_v44 }
 0xd71   :  { %v1477_v47 = vpop.permute.xlu1 %1476 }
 0xd72   :  { %v2759_v49 = vsub.f32 %v2742_v35, %v1386_v46  ;;  %v1389_v50 = vmul.f32 %v2756_v45, %v2756_v45 }
 0xd73   :  { %v1479_v51 = vpop.permute.xlu0 %1478 }
 0xd74   :  { %v1391_v52 = vsel %vm46_vm0, %v1389_v50, 0.0  ;;  %v1390_v53 = vmul.f32 %v2759_v49, %v2759_v49  ;;  %v1491_v54 = vsel %vm46_vm0, %v1477_v47, %v1479_v51 }
 0xd75   :  { %1392 = vadd.xlane.f32.xlu0 %v1391_v52  ;;  %v1475_v55 = vpop.permute.xlu1 %1474  ;;  %1517 = vmatprep.subr.bf16.mxu1 %v1491_v54 }
 0xd76   :  { %v1490_v56 = vsel %vm46_vm0, %v1475_v55, %v1477_v47  ;;  %v1394_v57 = vsel %vm46_vm0, %v1390_v53, 0.0 }
 0xd77   :  { %1518 = vmatpush1.bf16.msra.mxu1 %v1490_v56 }
 0xd79   :  { %1395 = vadd.xlane.f32.xlu0 %v1394_v57  ;;  %v1485_v59 = vpop.permute.xlu1 %1484 }
 0xd7d   :  { %v1487_v60 = vpop.permute.xlu1 %1486 }
 0xd7e   :  { %v1494_v4 = vsel %vm46_vm0, %v1485_v59, %v1487_v60 }
 0xd7f   :  { %1519 = vmatprep.subr.bf16.mxu1 %v1494_v4 }
 0xd81   :  { %v1481_v62 = vpop.permute.xlu1 %1480 }
 0xd82   :  { %v1492_v63 = vsel %vm46_vm0, %v1479_v51, %v1481_v62  ;;  %v1986_v51 = vld [vmem:[%s2914_s2 + $0x5] ss:$0 sm:$0xff]  ;;  %s2427_s2 = smov [#allocation7]  }
 0xd83   :  { %2178 = vmatpush3.bf16.msra.mxu0 %v1492_v63  ;;  %1827 = vrot.lane.b32.xlu1 %v1986_v51, %s2414_s17  ;;  %s1930_s13 = sshll.u32 %s2427_s2, 4  ;;  %s1931_s13 = int_to_ptr.vmem [resolvable:$true] %s1930_s13 }
 0xd84   :  { %2179 = vmatprep.subr.bf16.mxu0 %v2411_v9  ;;  %p2381_p3 = scmp.lt.s32.totalorder %s1931_s13, %s1931_s13 }
 0xd85   :  { %v1489_v0 = vpop.permute.xlu1 %1488 }
 0xd86   :  { %v1495_v5 = vsel %vm46_vm0, %v1487_v60, %v1489_v0 }
 0xd87   :  { %2180 = vmatpush3.bf16.msra.mxu0 %v1495_v5 }
 0xd88   :  { %2185 = vmatprep.subr.bf16.mxu0 %v2411_v9 }
 0xd89   :  { %v1507_v39 = vpop.permute.xlu1 %1506 }
 0xd8d   :  { %v1809_v58 = vpop.permute.xlu1 %1808 }
 0xd8f   :  { %1414 = vrot.lane.b32.xlu0 %v1975_v1, %s2410_s14 }
 0xd91   :  { %v1807_v41 = vpop.permute.xlu1 %1806 }
 0xd92   :  { %v1819_v43 = vsel %vm1508_vm8, %v1807_v41, %v1809_v58 }
 0xd93   :  { %1482 = vrot.lane.b32.xlu0 %v2252_v3, %s2414_s17 }
 0xd97   :  { %1504 = vrot.lane.b32.xlu0 %v1437_v10, %s2410_s14 }
 0xd9b   :  { %1502 = vrot.lane.b32.xlu0 %v1433_v13, %s2410_s14 }
 0xd9f   :  { %1810 = vrot.lane.b32.xlu0 %v2256_v17, %s2410_s14 }
 0xda3   :  { %1814 = vrot.lane.b32.xlu0 %v2258_v19, %s2410_s14 }
 0xda7   :  { %1812 = vrot.lane.b32.xlu0 %v2261_v20, %s2410_s14  ;;  %s2376_s14 = scalar_lea.vmem %s1931_s13, 256 }
 0xda8   :  { %p2377_p2 = scmp.ne.s32.totalorder %s1931_s13, %s2376_s14  ;;  %p2382_p4 = scmp.lt.s32.totalorder %s2376_s14, %s2376_s14 }
 0xdaa   :  { %p2383_p5 = por %p2382_p4, %p2381_p3 }
 0xdac   :  { %p2384_p6 = pnand %p2383_p5, %p2377_p2 }
 0xe02   :  { %v1393_v12 = vpop.xlane.xlu0 %1392 }
 0xe03   :  { %v1397_v14 = vmul.f32 0.03125, %v1393_v12 }
 0xe05   :  { %v1399_v21 = vadd.f32 1e-05, %v1397_v14 }
 0xe06   :  { %v1396_v22 = vpop.xlane.xlu0 %1395 }
 0xe07   :  { %2304 = vrsqrt.f32 %v1399_v21  ;;  %v1398_v23 = vmul.f32 0.03125, %v1396_v22 }
 0xe09   :  { %v1400_v24 = vadd.f32 1e-05, %v1398_v23 }
 0xe0a   :  { %v1415_v25 = vpop.permute.xlu0 %1414 }
 0xe0b   :  { %2306 = vrsqrt.f32 %v1400_v24 }
 0xe0e   :  { %v1483_v26 = vpop.permute.xlu0 %1482 }
 0xe0f   :  { %v1493_v28 = vsel %vm46_vm0, %v1483_v26, %v1485_v59 }
 0xe10   :  { %1520 = vmatpush1.bf16.msra.mxu1 %v1493_v28 }
 0xe11   :  { %v2305_v29 = vpop.eup %2304 }
 0xe12   :  { %v1403_v27 = vmul.f32 %v2305_v29, %v2756_v45  ;;  %v1505_v38 = vpop.permute.xlu0 %1504  ;;  %v1817_v45 = vpop.permute.xlu1 %1816 }
 0xe13   :  { %v1837_v50 = vsel %vm104_vm2, %v1817_v45, 0 }
 0xe14   :  { %v1412_v31 = vmul.f32 %v1975_v1, %v1403_v27 }
 0xe15   :  { %v2307_v2 = vpop.eup %2306 }
 0xe16   :  { %v1404_v30 = vmul.f32 %v2307_v2, %v2759_v49  ;;  %v1417_v34 = vadd.f32 %v1415_v25, %v1412_v31  ;;  %v1503_v40 = vpop.permute.xlu0 %1502 }
 0xe17   :  { %v1509_v52 = vsel %vm1508_vm8, %v1503_v40, %v1505_v38 }
 0xe18   :  { %v1413_v33 = vmul.f32 %v1975_v1, %v1404_v30 }
 0xe1a   :  { %v1418_v36 = vadd.f32 %v1415_v25, %v1413_v33  ;;  %v1811_v61 = vpop.permute.xlu0 %1810 }
 0xe1b   :  { %v1820_v42 = vsel %vm1508_vm8, %v1809_v58, %v1811_v61  ;;  %v1834_v48 = vsel %vm104_vm2, %v1811_v61, 0 }
 0xe1c   :  { %v1419_v37 = vpack.c.bf16 %v1418_v36, %v1417_v34  ;;  %1839 = vmatprep.subr.bf16.mxu1 %v1820_v42 }
 0xe1e   :  { %1984 = vmatmul.mubr.msk.bf16.vlgmr.msra.gmra.mrb[40].mxu1 %vm46_vm0, %v1419_v37  ;;  %2182 = vmatmul.mubr.msk.bf16.vlgmr.msra.gmra.mrb[44].mxu0 %vm46_vm0, %v1419_v37  ;;  %v1815_v44 = vpop.permute.xlu0 %1814 }
 0xe1f   :  { %2189 = vmatprep.mubr.msk.bf16.mxu0 %vm2412_vm1, %v2411_v9  ;;  %1840 = vmatpush1.bf16.xpose.msra.mxu1 %v1819_v43  ;;  %v1822_v47 = vsel %vm1508_vm8, %v1815_v44, %v1817_v45 }
 0xe20   :  { %2186 = vmatpush3.bf16.xpose.msra.mxu0 %v1834_v48  ;;  %1841 = vmatprep.subr.bf16.mxu1 %v1822_v47 }
 0xe21   :  { %2187 = vmatprep.subr.bf16.mxu0 %v2411_v9  ;;  %v1510_v9 = vsel %vm1508_vm8, %v1505_v38, %v1507_v39 }
 0xe22   :  { %v1813_v46 = vpop.permute.xlu0 %1812 }
 0xe23   :  { %v1821_v49 = vsel %vm1508_vm8, %v1813_v46, %v1815_v44 }
 0xe27   :  { %1842 = vmatpush1.bf16.xpose.msra.mxu1 %v1821_v49 }
 0xe28   :  { %2188 = vmatpush3.bf16.xpose.msra.mxu0 %v1837_v50 }
 0xef1   :  { %v1551_v53 = vpop.f32.mrb[40].mxu1  ;;  %v1594_v54 = vpop.f32.mrb[44].mxu0 }
 0xef2   :  { %v2816_v55 = vadd.f32 %v1551_v53, %v1509_v52  ;;  %v2818_v56 = vadd.f32 %v1594_v54, %v1507_v39  ;;  %v1553_v57 = vpop.f32.mrb[41].mxu1  ;;  %v2183_v59 = vpop.f32.mrb[45].mxu0 }
 0xef3   :  { %v2820_v60 = vadd.f32 %v1553_v57, %v1510_v9  ;;  %v1555_v62 = vpop.f32.mrb[42].mxu1  ;;  %v1597_v63 = vpop.f32.mrb[46].mxu0 }
 0xef4   :  { %v2823_v1 = vmul.f32 0.70710677, %v2816_v55  ;;  %v2826_v3 = vmul.f32 0.70710677, %v2818_v56  ;;  %v2831_v0 = vadd.f32 %v1555_v62, %v1509_v52  ;;  %v1557_v5 = vpop.f32.mrb[43].mxu1  ;;  %v2184_v6 = vpop.f32.mrb[47].mxu0  ;;  %v2840_v20 = vadd.f32 %v1597_v63, %v1507_v39 }
 0xef5   :  { %v2829_v4 = vmul.f32 0.70710677, %v2820_v60  ;;  %v2845_v23 = vadd.f32 %v1557_v5, %v1510_v9 }
 0xef6   :  { %v1613_v7 = vand.u32 2147483647, %v2823_v1  ;;  %v1615_v8 = vand.u32 2147483647, %v2826_v3  ;;  %v2837_v11 = vmul.f32 0.70710677, %v2831_v0 }
 0xef7   :  { %v1614_v10 = vand.u32 2147483647, %v2829_v4  ;;  %v2843_v22 = vmul.f32 0.70710677, %v2840_v20  ;;  %v2849_v25 = vmul.f32 0.70710677, %v2845_v23 }
 0xef8   :  { %v1619_v13 = vmul.f32 0.3275911, %v1613_v7  ;;  %v1621_v16 = vmul.f32 0.3275911, %v1615_v8  ;;  %v1616_v18 = vand.u32 2147483647, %v2837_v11 }
 0xef9   :  { %v1620_v17 = vmul.f32 0.3275911, %v1614_v10  ;;  %v1618_v24 = vand.u32 2147483647, %v2843_v22  ;;  %v1697_v26 = vsub.f32 0.0, %v1613_v7  ;;  %v1699_v29 = vsub.f32 0.0, %v1615_v8 }
 0xefa   :  { %v1625_v19 = vadd.f32 1.0, %v1619_v13  ;;  %v1627_v15 = vadd.f32 1.0, %v1621_v16  ;;  %v1622_v12 = vmul.f32 0.3275911, %v1616_v18  ;;  %v1617_v27 = vand.u32 2147483647, %v2849_v25 }
 0xefb   :  { %v1626_v14 = vadd.f32 1.0, %v1620_v17  ;;  %v1624_v28 = vmul.f32 0.3275911, %v1618_v24  ;;  %v1703_v33 = vmul.f32 %v1697_v26, %v1613_v7  ;;  %v1698_v34 = vsub.f32 0.0, %v1614_v10 }
 0xefc   :  { %2308 = vrcp.f32 %v1625_v19  ;;  %v1628_v21 = vadd.f32 1.0, %v1622_v12  ;;  %v1623_v30 = vmul.f32 0.3275911, %v1617_v27  ;;  %v1705_v38 = vmul.f32 %v1699_v29, %v1615_v8 }
 0xefd   :  { %2310 = vrcp.f32 %v1627_v15  ;;  %v1630_v2 = vadd.f32 1.0, %v1624_v28  ;;  %v1700_v58 = vsub.f32 0.0, %v1616_v18  ;;  %v1709_v42 = vmul.f32 1.442695, %v1703_v33 }
 0xefe   :  { %2312 = vrcp.f32 %v1626_v14  ;;  %v1629_v39 = vadd.f32 1.0, %v1623_v30  ;;  %v1704_v48 = vmul.f32 %v1698_v34, %v1614_v10  ;;  %v1713_v45 = vmul.f32 1.442695, %v1705_v38 }
 0xeff   :  { %2314 = vrcp.f32 %v1628_v21  ;;  %v1706_v50 = vmul.f32 %v1700_v58, %v1616_v18  ;;  %v1702_v51 = vsub.f32 0.0, %v1618_v24  ;;  %v1701_v59 = vsub.f32 0.0, %v1617_v27 }
 0xf00   :  { %2316 = vrcp.f32 %v1630_v2  ;;  %v1711_v57 = vmul.f32 1.442695, %v1704_v48  ;;  %vm1733_vm9 = vcmp.ge.f32.partialorder %v2823_v1, 0.0  ;;  %vm1735_vm10 = vcmp.ge.f32.partialorder %v2826_v3, 0.0 }
 0xf01   :  { %2318 = vrcp.f32 %v1629_v39  ;;  %v1715_v8 = vmul.f32 1.442695, %v1706_v50  ;;  %v1708_v10 = vmul.f32 %v1702_v51, %v1618_v24  ;;  %v1707_v15 = vmul.f32 %v1701_v59, %v1617_v27 }
 0xf02   :  { %2320 = vpow2.f32 %v1709_v42  ;;  %vm1736_vm11 = vcmp.ge.f32.partialorder %v2837_v11, 0.0  ;;  %vm1734_vm12 = vcmp.ge.f32.partialorder %v2829_v4, 0.0  ;;  %vm1738_vm13 = vcmp.ge.f32.partialorder %v2843_v22, 0.0 }
 0xf03   :  { %2322 = vpow2.f32 %v1713_v45  ;;  %v1719_v2 = vmul.f32 1.442695, %v1708_v10  ;;  %v1717_v39 = vmul.f32 1.442695, %v1707_v15  ;;  %vm1737_vm14 = vcmp.ge.f32.partialorder %v2849_v25, 0.0 }
 0xf04   :  { %2324 = vpow2.f32 %v1711_v57  ;;  %v1602_v22 = vmul.f32 0.5, %v2820_v60 }
 0xf05   :  { %2326 = vpow2.f32 %v1715_v8 }
 0xf06   :  { %v2309_v31 = vpop.eup %2308  ;;  %2328 = vpow2.f32 %v1719_v2 }
 0xf07   :  { %v2311_v36 = vpop.eup %2310  ;;  %v1643_v37 = vmul.f32 1.0614054, %v2309_v31  ;;  %2330 = vpow2.f32 %v1717_v39 }
 0xf08   :  { %v1645_v40 = vmul.f32 1.0614054, %v2311_v36  ;;  %v2852_v41 = vpop.eup %2312 }
 0xf09   :  { %v1649_v61 = vadd.f32 -1.4531521, %v1643_v37  ;;  %v1644_v46 = vmul.f32 1.0614054, %v2852_v41  ;;  %v2855_v47 = vpop.eup %2314 }
 0xf0a   :  { %v1651_v43 = vadd.f32 -1.4531521, %v1645_v40  ;;  %v1646_v53 = vmul.f32 1.0614054, %v2855_v47  ;;  %v2859_v6 = vpop.eup %2316 }
 0xf0b   :  { %v1655_v44 = vmul.f32 %v2309_v31, %v1649_v61  ;;  %v1650_v9 = vadd.f32 -1.4531521, %v1644_v46  ;;  %v1648_v18 = vmul.f32 1.0614054, %v2859_v6  ;;  %v2863_v12 = vpop.eup %2318 }
 0xf0c   :  { %v1657_v49 = vmul.f32 %v2311_v36, %v1651_v43  ;;  %v1652_v5 = vadd.f32 -1.4531521, %v1646_v53  ;;  %v1647_v24 = vmul.f32 1.0614054, %v2863_v12  ;;  %v2321_v43 = vpop.eup %2320 }
 0xf0d   :  { %v1661_v52 = vadd.f32 1.4214138, %v1655_v44  ;;  %v1656_v63 = vmul.f32 %v2852_v41, %v1650_v9  ;;  %v1654_v28 = vadd.f32 -1.4531521, %v1648_v18  ;;  %v2323_v45 = vpop.eup %2322 }
 0xf0e   :  { %v1663_v54 = vadd.f32 1.4214138, %v1657_v49  ;;  %v1658_v17 = vmul.f32 %v2855_v47, %v1652_v5  ;;  %v1653_v27 = vadd.f32 -1.4531521, %v1647_v24  ;;  %v2325_v59 = vpop.eup %2324 }
 0xf0f   :  { %v1667_v62 = vmul.f32 %v2309_v31, %v1661_v52  ;;  %v1662_v16 = vadd.f32 1.4214138, %v1656_v63  ;;  %v1660_v37 = vmul.f32 %v2859_v6, %v1654_v28  ;;  %v2327_v10 = vpop.eup %2326 }
 0xf10   :  { %v1669_v7 = vmul.f32 %v2311_v36, %v1663_v54  ;;  %v1664_v26 = vadd.f32 1.4214138, %v1658_v17  ;;  %v1659_v44 = vmul.f32 %v2863_v12, %v1653_v27 }
 0xf11   :  { %v1673_v13 = vadd.f32 -0.28449672, %v1667_v62  ;;  %v1668_v21 = vmul.f32 %v2852_v41, %v1662_v16  ;;  %v1666_v42 = vadd.f32 1.4214138, %v1660_v37 }
 0xf12   :  { %v1675_v19 = vadd.f32 -0.28449672, %v1669_v7  ;;  %v1670_v34 = vmul.f32 %v2855_v47, %v1664_v26  ;;  %v1665_v9 = vadd.f32 1.4214138, %v1659_v44  ;;  %v2329_v26 = vpop.eup %2328 }
 0xf13   :  { %v1679_v14 = vmul.f32 %v2309_v31, %v1673_v13  ;;  %v1674_v33 = vadd.f32 -0.28449672, %v1668_v21  ;;  %v1672_v51 = vmul.f32 %v2859_v6, %v1666_v42  ;;  %v2331_v2 = vpop.eup %2330 }
 0xf14   :  { %v1681_v29 = vmul.f32 %v2311_v36, %v1675_v19  ;;  %v1676_v61 = vadd.f32 -0.28449672, %v1670_v34  ;;  %v1671_v62 = vmul.f32 %v2863_v12, %v1665_v9 }
 0xf15   :  { %v1685_v30 = vadd.f32 0.2548296, %v1679_v14  ;;  %v1680_v58 = vmul.f32 %v2852_v41, %v1674_v33  ;;  %v1678_v57 = vadd.f32 -0.28449672, %v1672_v51 }
 0xf16   :  { %v1687_v38 = vadd.f32 0.2548296, %v1681_v29  ;;  %v1682_v50 = vmul.f32 %v2855_v47, %v1676_v61  ;;  %v1677_v13 = vadd.f32 -0.28449672, %v1671_v62 }
 0xf17   :  { %v1691_v40 = vmul.f32 %v2309_v31, %v1685_v30  ;;  %v1686_v49 = vadd.f32 0.2548296, %v1680_v58  ;;  %v1684_v8 = vmul.f32 %v2859_v6, %v1678_v57 }
 0xf18   :  { %v1693_v48 = vmul.f32 %v2311_v36, %v1687_v38  ;;  %v1688_v54 = vadd.f32 0.2548296, %v1682_v50  ;;  %v1683_v19 = vmul.f32 %v2863_v12, %v1677_v13  ;;  %v1601_v38 = vmul.f32 0.5, %v2816_v55 }
 0xf19   :  { %v1721_v46 = vmul.f32 %v2321_v43, %v1691_v40  ;;  %v1692_v53 = vmul.f32 %v2852_v41, %v1686_v49  ;;  %v1690_v17 = vadd.f32 0.2548296, %v1684_v8  ;;  %v1606_v55 = vmul.f32 0.5, %v2840_v20 }
 0xf1a   :  { %v1723_v52 = vmul.f32 %v2323_v45, %v1693_v48  ;;  %v1694_v7 = vmul.f32 %v2855_v47, %v1688_v54  ;;  %v1689_v28 = vadd.f32 0.2548296, %v1683_v19  ;;  %v1605_v50 = vmul.f32 0.5, %v2845_v23  ;;  %v1828_v54 = vpop.permute.xlu1 %1827 }
 0xf1b   :  { %v1727_v31 = vsub.f32 1.0, %v1721_v46  ;;  %v1722_v5 = vmul.f32 %v2325_v59, %v1692_v53  ;;  %v1696_v21 = vmul.f32 %v2859_v6, %v1690_v17  ;;  %v1604_v6 = vmul.f32 0.5, %v2831_v0 }
 0xf1c   :  { %v1729_v36 = vsub.f32 1.0, %v1723_v52  ;;  %v1724_v16 = vmul.f32 %v2327_v10, %v1694_v7  ;;  %v1695_v33 = vmul.f32 %v2863_v12, %v1689_v28  ;;  %v1603_v12 = vmul.f32 0.5, %v2818_v56 }
 0xf1d   :  { %v1739_v63 = vsub.f32 0.0, %v1727_v31  ;;  %v1728_v41 = vsub.f32 1.0, %v1722_v5  ;;  %v1726_v29 = vmul.f32 %v2329_v26, %v1696_v21 }
 0xf1e   :  { %v1741_v18 = vsub.f32 0.0, %v1729_v36  ;;  %v1730_v14 = vsub.f32 1.0, %v1724_v16  ;;  %v1725_v39 = vmul.f32 %v2331_v2, %v1695_v33 }
 0xf1f   :  { %v1745_v15 = vsel %vm1733_vm9, %v1727_v31, %v1739_v63  ;;  %v1740_v1 = vsub.f32 0.0, %v1728_v41  ;;  %v1732_v37 = vsub.f32 1.0, %v1726_v29 }
 0xf20   :  { %v1742_v47 = vsub.f32 0.0, %v1730_v14  ;;  %v1751_v24 = vadd.f32 1.0, %v1745_v15  ;;  %v1747_v30 = vsel %vm1735_vm10, %v1729_v36, %v1741_v18  ;;  %v1731_v42 = vsub.f32 1.0, %v1725_v39 }
 0xf21   :  { %v1753_v40 = vadd.f32 1.0, %v1747_v30  ;;  %v1744_v3 = vsub.f32 0.0, %v1732_v37  ;;  %v1746_v58 = vsel %vm1734_vm12, %v1728_v41, %v1740_v1 }
 0xf22   :  { %v1748_v34 = vsel %vm1736_vm11, %v1730_v14, %v1742_v47  ;;  %v1757_v11 = vmul.f32 %v1751_v24, %v1601_v38  ;;  %v1743_v0 = vsub.f32 0.0, %v1731_v42  ;;  %v1752_v45 = vadd.f32 1.0, %v1746_v58 }
 0xf23   :  { %v1754_v27 = vadd.f32 1.0, %v1748_v34  ;;  %v1750_v43 = vsel %vm1738_vm13, %v1732_v37, %v1744_v3  ;;  %v1759_v46 = vmul.f32 %v1753_v40, %v1603_v12 }
 0xf24   :  { %v1756_v44 = vadd.f32 1.0, %v1750_v43  ;;  %v1749_v49 = vsel %vm1737_vm14, %v1731_v42, %v1743_v0  ;;  %v1758_v9 = vmul.f32 %v1752_v45, %v1602_v22 }
 0xf25   :  { %v1760_v61 = vmul.f32 %v1754_v27, %v1604_v6  ;;  %v1755_v51 = vadd.f32 1.0, %v1749_v49 }
 0xf26   :  { %v1762_v4 = vmul.f32 %v1756_v44, %v1606_v55 }
 0xf27   :  { %v1771_v48 = vpack.c.bf16 %v1760_v61, %v1757_v11  ;;  %v1761_v56 = vmul.f32 %v1755_v51, %v1605_v50 }
 0xf28   :  { %v1773_v52 = vpack.c.bf16 %v1762_v4, %v1759_v46 }
 0xf29   :  { %v1772_v31 = vpack.c.bf16 %v1761_v56, %v1758_v9 }
 0xf2a   :  { %2190 = vmatmul.mubr.msk.bf16.vlgmr.msra.gmra.mrb[48].mxu0 %vm104_vm2, %v1773_v52 }
 0xf2b   :  { %1871 = vmatprep.mubr.bf16.mxu1 %v1772_v31 }
 0xf2c   :  { %1872 = vmatmul.mubr.bf16.vlgmr.msra.gmra.mrb[44].mxu1 %v1771_v48 }
 0xffd   :  { %v1914_v20 = vpop.f32.mrb[48].mxu0 }
 0xffe   :  { %v2191_v53 = vpop.f32.mrb[49].mxu0 }
 0xfff   :  { %v1917_v25 = vpop.f32.mrb[50].mxu0  ;;  %v1873_v59 = vpop.f32.mrb[44].mxu1 }
0x1000   :  { %v2192_v57 = vpop.f32.mrb[51].mxu0  ;;  %v1874_v36 = vadd.f32 %v1873_v59, %v1828_v54  ;;  %v1875_v62 = vpop.f32.mrb[45].mxu1 }
0x1001   :  { %v1876_v60 = vpop.f32.mrb[46].mxu1 }
0x1002   :  { %v1915_v63 = vadd.f32 %v1914_v20, %v1874_v36  ;;  %v1877_v23 = vadd.f32 %v1876_v60, %v1828_v54  ;;  %v1878_v5 = vpop.f32.mrb[47].mxu1 }
0x1004   :  { %v1921_v7 = vadd.f32 %v1915_v63, %v2739_v32  ;;  %v1918_v8 = vadd.f32 %v1917_v25, %v1877_v23 }
0x1006   :  { %1923 = vst.msk [vmem:[#allocation7] sm:$0xff] %vm46_vm0, %v1921_v7  ;;  %v1922_v10 = vadd.f32 %v1918_v8, %v2742_v35 }
0x1008   :  { %1924 = vst.msk [vmem:[#allocation7 + $0x8] sm:$0xff] %vm46_vm0, %v1922_v10 }
0x1009   :  { %2387 = shalt.err (!%p2384_p6)
}
0x100a   :  { %s2388_s16 = scalar_lea.hbm %s2915_s3, 256 }
0x100b   :  { %p2389_p7 = scmp.ne.s32.totalorder %s2915_s3, %s2388_s16  ;;  %p2392_p8 = scmp.lt.u32.totalorder %s2388_s16, %s2915_s3 }
0x100d   :  { %p2394_p9 = pnand %p2392_p8, %p2389_p7 }
0x100f   :  { %2397 = shalt.err (!%p2394_p9)
}
0x1010   :  { %1936 = dma.vmem_to_hbm [thread:$0]  %s1931_s13, 256, %s2915_s3, [#allocation4], %s2405_s22, %s2405_s22, %s2406_s23  }
0x1011   :  { %2402 = dma.done.wait [#allocation4], 256  }
0x1012   :  { %2403 = vsyncadd [#allocation4], 4294967040 }
0x1013   :  { %1940 = vsyncpa [#allocation3], 1 }
0x1014   :  { %1941 = vsyncpa [#allocation6], 1 }
0x1015   :  { %1942 = vsyncpa [#allocation4], 1 }

</bundles_post_ra>
